<compile_context>
chip_gen: v6e
topology: v6e:2x2x1
jax: 0.10.0
libtpu: 0.0.40
codegen_flags: <defaults>
</compile_context>

<pallas_src>
import math

import jax
import jax.numpy as jnp
from jax.experimental import pallas as pl
from jax.experimental.pallas import tpu as pltpu

BN_EPS = 1e-5
COMPUTE_DTYPE = jnp.bfloat16  # MXU operand dtype; accumulation stays f32.


# ----------------------------------------------------------------------------
# Fused kernel: gc1 -> relu -> (dropout: identity) -> gc2 with conv+BN folded
# through W2 (W2_fused) and the bias (bias').
# ----------------------------------------------------------------------------
def gcn_fused_kernel(x_ref, adj_ref, w1_ref, b1_ref, w2f_ref, bias_ref, out_ref):
    mxu_dt = w2f_ref.dtype  # bf16 (or f32 if caller disabled the cast)

    # gc1: support = x @ W1 ; h = relu(adj @ support + b1)
    s1 = jnp.dot(x_ref[...], w1_ref[...], preferred_element_type=jnp.float32)
    h = jnp.dot(adj_ref[...], s1.astype(mxu_dt), preferred_element_type=jnp.float32)
    h = jnp.maximum(h + b1_ref[...], 0.0)

    # dropout: inference mode -> identity (no-op)

    # gc2 + 1x1 conv + BN (eval), all folded into (W2_fused, bias'):
    #   out = adj @ (h @ W2_fused) + bias'
    t = jnp.dot(h.astype(mxu_dt), w2f_ref[...], preferred_element_type=jnp.float32)
    y = jnp.dot(adj_ref[...], t.astype(mxu_dt), preferred_element_type=jnp.float32)
    out_ref[...] = (y + bias_ref[...]).astype(out_ref.dtype)


def gcn_fused_forward(x, adj, w1, b1, w2_fused, bias_fused, *, tn=None):
    n, nin = x.shape
    nhid = w1.shape[1]
    cout = w2_fused.shape[1]
    if tn is None:
        tn = cout  # single grid step by default (best on v5e/v6e); tn=1024 on v7x.
    assert cout % tn == 0 and tn % 128 == 0

    flops = 2 * n * (nin * nhid + n * nhid + nhid * cout + n * cout)
    bytes_accessed = (
        x.size * x.dtype.itemsize
        + adj.size * adj.dtype.itemsize
        + w1.size * w1.dtype.itemsize
        + b1.size * 4
        + w2_fused.size * w2_fused.dtype.itemsize
        + bias_fused.size * 4
        + n * cout * 4  # f32 output
    )

    grid_spec = pltpu.PrefetchScalarGridSpec(
        num_scalar_prefetch=0,
        grid=(cout // tn,),
        in_specs=[
            pl.BlockSpec((n, nin), lambda j: (0, 0)),       # x          (resident)
            pl.BlockSpec((n, n), lambda j: (0, 0)),         # adj        (resident)
            pl.BlockSpec((nin, nhid), lambda j: (0, 0)),    # W1         (resident)
            pl.BlockSpec((1, nhid), lambda j: (0, 0)),      # b1         (resident)
            pl.BlockSpec((nhid, tn), lambda j: (0, j)),     # W2_fused tile
            pl.BlockSpec((1, tn), lambda j: (0, j)),        # bias' tile
        ],
        out_specs=pl.BlockSpec((n, tn), lambda j: (0, j)),  # lane-dense output tile
    )
    return pl.pallas_call(
        gcn_fused_kernel,
        out_shape=jax.ShapeDtypeStruct((n, cout), jnp.float32),
        grid_spec=grid_spec,
        compiler_params=pltpu.CompilerParams(dimension_semantics=("parallel",)),
        cost_estimate=pl.CostEstimate(
            flops=flops, transcendentals=0, bytes_accessed=bytes_accessed
        ),
    )(x, adj, w1, b1, w2_fused, bias_fused)


# ----------------------------------------------------------------------------
# One-time host-side parameter prep: fold BN + conv + gc2 bias through W2, cast.
# All folds are done in f32 BEFORE the bf16 cast (single rounding of the weights).
# ----------------------------------------------------------------------------
def fuse_params(params, compute_dtype=COMPUTE_DTYPE):
    scale = params["bn_gamma"] * jax.lax.rsqrt(params["bn_var"] + BN_EPS)   # (Cout,)
    w_prime = params["w_conv"].T * scale[None, :]                           # (Cin, Cout)
    w2_fused = params["w2"] @ w_prime                                       # (nhid, Cout)
    bias_fused = (
        params["bn_beta"] - params["bn_mean"] * scale + params["b2"] @ w_prime
    )                                                                       # (Cout,)
    return {
        "w1": params["w1"].astype(compute_dtype),
        "b1": params["b1"].reshape(1, -1).astype(jnp.float32),
        "w2_fused": w2_fused.astype(compute_dtype),
        "bias_fused": bias_fused.reshape(1, -1).astype(jnp.float32),
    }


# ----------------------------------------------------------------------------
# Full GCN forward (single pallas_call + plain-JAX layout glue at the end).
# Inputs x/adj are expected already in the compute dtype (cast hoisted to prep).
# ----------------------------------------------------------------------------
def gcn_model_forward(x, adj, fused, *, tn=None):
    n = x.shape[0]
    s = int(math.isqrt(n))
    assert s * s == n, "number of graph nodes must be a perfect square"

    y = gcn_fused_forward(
        x, adj, fused["w1"], fused["b1"], fused["w2_fused"], fused["bias_fused"], tn=tn
    )
    # y: (N, 2048) in (node, channel) layout -> NCHW (1, 2048, s, s)
    cout = y.shape[1]
    return jnp.transpose(y, (1, 0)).reshape(1, cout, s, s)


def init_params(key, nin, nhid, nout, cout):
    k = jax.random.split(key, 5)
    stdv1 = 1.0 / math.sqrt(nhid)
    stdv2 = 1.0 / math.sqrt(nout)
    stdvc = 1.0 / math.sqrt(nout)  # conv in_channels == nout == 1024
    return {
        "w1": jax.random.uniform(k[0], (nin, nhid), jnp.float32, -stdv1, stdv1),
        "b1": jax.random.uniform(k[1], (nhid,), jnp.float32, -stdv1, stdv1),
        "w2": jax.random.uniform(k[2], (nhid, nout), jnp.float32, -stdv2, stdv2),
        "b2": jax.random.uniform(k[3], (nout,), jnp.float32, -stdv2, stdv2),
        "w_conv": jax.random.uniform(k[4], (cout, nout), jnp.float32, -stdvc, stdvc),
        "bn_gamma": jnp.ones((cout,), jnp.float32),
        "bn_beta": jnp.zeros((cout,), jnp.float32),
        "bn_mean": jnp.zeros((cout,), jnp.float32),
        "bn_var": jnp.ones((cout,), jnp.float32),
    }


# Pure-JAX f32 reference of the original (unfused) module, for validation.
def gcn_reference(x, adj, params):
    h = jnp.maximum(adj @ (x @ params["w1"]) + params["b1"], 0.0)
    g = adj @ (h @ params["w2"]) + params["b2"]
    y = g @ params["w_conv"].T
    scale = params["bn_gamma"] / jnp.sqrt(params["bn_var"] + BN_EPS)
    y = (y - params["bn_mean"]) * scale + params["bn_beta"]
    s = int(math.isqrt(x.shape[0]))
    return jnp.transpose(y, (1, 0)).reshape(1, y.shape[1], s, s)


if __name__ == "__main__":
    # The module hard-codes Conv2d(1024, 2048, 1x1), so nout must be 1024 and the
    # node count N must be a perfect square. Keep the rest of the shapes small.
    N = 64        # graph nodes (-> 8x8 spatial)
    NIN = 32      # input feature dim
    NHID = 32     # hidden feature dim
    NOUT = 1024   # gc2 output dim == conv input channels
    COUT = 2048   # conv output channels

    key = jax.random.PRNGKey(0)
    kx, kadj, kp = jax.random.split(key, 3)
    x = jax.random.normal(kx, (N, NIN), jnp.float32)
    adj_raw = jax.random.uniform(kadj, (N, N), jnp.float32)
    adj = adj_raw / jnp.sum(adj_raw, axis=1, keepdims=True)  # row-normalized adjacency
    params = init_params(kp, NIN, NHID, NOUT, COUT)

    # One-time prep (conv+BN fold through W2, bf16 casts) — NOT per forward call.
    fused = jax.tree_util.tree_map(jax.block_until_ready, fuse_params(params))
    x_c = x.astype(COMPUTE_DTYPE)      # hoisted input casts (steady-state path is clean)
    adj_c = adj.astype(COMPUTE_DTYPE)

    fwd = jax.jit(gcn_model_forward, static_argnames=("tn",))
    out = jax.block_until_ready(fwd(x_c, adj_c, fused))  # tn defaults to 2048 (grid=(1,))
    assert out.shape == (1, COUT, 8, 8), out.shape
    assert bool(jnp.all(jnp.isfinite(out)))

    # Numerical sanity vs the f32 reference (bf16 operands -> loose tolerance).
    ref = gcn_reference(x, adj, params)
    err = float(jnp.max(jnp.abs(out - ref)) / (jnp.max(jnp.abs(ref)) + 1e-6))
    assert err < 5e-2, f"normalized max error too large: {err:.3e}"

    print("KERNEL_OK")
</pallas_src>

<mosaic_0001>
module attributes {stable_mosaic.version = 11 : i64} {
  func.func @gcn_fused_kernel(%arg0: i32, %arg1: memref<64x32xbf16, #tpu.memory_space<vmem>>, %arg2: memref<64x64xbf16, #tpu.memory_space<vmem>>, %arg3: memref<32x32xbf16, #tpu.memory_space<vmem>>, %arg4: memref<1x32xf32, #tpu.memory_space<vmem>>, %arg5: memref<32x2048xbf16, #tpu.memory_space<vmem>>, %arg6: memref<1x2048xf32, #tpu.memory_space<vmem>>, %arg7: memref<64x2048xf32, #tpu.memory_space<vmem>>) attributes {dimension_semantics = [#tpu.dimension_semantics<parallel>], iteration_bounds = array<i64: 1>, scalar_prefetch = 0 : i64, scratch_operands = 0 : i64, tpu.core_type = #tpu.core_type<tc>, window_params = [{pipeline_mode = #tpu.pipeline_mode<synchronous>, transform_indices = @transform_0, window_bounds = array<i64: 64, 32>}, {pipeline_mode = #tpu.pipeline_mode<synchronous>, transform_indices = @transform_1, window_bounds = array<i64: 64, 64>}, {pipeline_mode = #tpu.pipeline_mode<synchronous>, transform_indices = @transform_2, window_bounds = array<i64: 32, 32>}, {pipeline_mode = #tpu.pipeline_mode<synchronous>, transform_indices = @transform_3, window_bounds = array<i64: 1, 32>}, {transform_indices = @transform_4, window_bounds = array<i64: 32, 2048>}, {transform_indices = @transform_5, window_bounds = array<i64: 1, 2048>}, {transform_indices = @transform_6, window_bounds = array<i64: 64, 2048>}]} {
    %c0 = arith.constant 0 : index
    %c0_0 = arith.constant 0 : index
    %0 = vector.load %arg1[%c0, %c0_0] : memref<64x32xbf16, #tpu.memory_space<vmem>>, vector<64x32xbf16>
    %c0_1 = arith.constant 0 : index
    %c0_2 = arith.constant 0 : index
    %1 = vector.load %arg3[%c0_1, %c0_2] : memref<32x32xbf16, #tpu.memory_space<vmem>>, vector<32x32xbf16>
    %cst = arith.constant dense<0.000000e+00> : vector<64x32xf32>
    %2 = tpu.matmul %0, %1, %cst {dimension_numbers = #tpu.dot_dimension_numbers<[1], [0], [0], [1], [0, 0, 1, 1], [], []>} : vector<64x32xbf16>, vector<32x32xbf16>, vector<64x32xf32> -> vector<64x32xf32>
    %c0_3 = arith.constant 0 : index
    %c0_4 = arith.constant 0 : index
    %3 = vector.load %arg2[%c0_3, %c0_4] : memref<64x64xbf16, #tpu.memory_space<vmem>>, vector<64x64xbf16>
    %4 = arith.truncf %2 : vector<64x32xf32> to vector<64x32xbf16>
    %cst_5 = arith.constant dense<0.000000e+00> : vector<64x32xf32>
    %5 = tpu.matmul %3, %4, %cst_5 {dimension_numbers = #tpu.dot_dimension_numbers<[1], [0], [0], [1], [0, 0, 1, 1], [], []>} : vector<64x64xbf16>, vector<64x32xbf16>, vector<64x32xf32> -> vector<64x32xf32>
    %c0_6 = arith.constant 0 : index
    %c0_7 = arith.constant 0 : index
    %6 = vector.load %arg4[%c0_6, %c0_7] : memref<1x32xf32, #tpu.memory_space<vmem>>, vector<1x32xf32>
    %7 = vector.broadcast %6 : vector<1x32xf32> to vector<64x32xf32>
    %8 = arith.addf %5, %7 : vector<64x32xf32>
    %cst_8 = arith.constant 0.000000e+00 : f32
    %9 = vector.broadcast %cst_8 : f32 to vector<64x32xf32>
    %10 = arith.maximumf %8, %9 : vector<64x32xf32>
    %11 = arith.truncf %10 : vector<64x32xf32> to vector<64x32xbf16>
    %c0_9 = arith.constant 0 : index
    %c0_10 = arith.constant 0 : index
    %12 = vector.load %arg5[%c0_9, %c0_10] : memref<32x2048xbf16, #tpu.memory_space<vmem>>, vector<32x2048xbf16>
    %cst_11 = arith.constant dense<0.000000e+00> : vector<64x2048xf32>
    %13 = tpu.matmul %11, %12, %cst_11 {dimension_numbers = #tpu.dot_dimension_numbers<[1], [0], [0], [1], [0, 0, 1, 1], [], []>} : vector<64x32xbf16>, vector<32x2048xbf16>, vector<64x2048xf32> -> vector<64x2048xf32>
    %c0_12 = arith.constant 0 : index
    %c0_13 = arith.constant 0 : index
    %14 = vector.load %arg2[%c0_12, %c0_13] : memref<64x64xbf16, #tpu.memory_space<vmem>>, vector<64x64xbf16>
    %15 = arith.truncf %13 : vector<64x2048xf32> to vector<64x2048xbf16>
    %cst_14 = arith.constant dense<0.000000e+00> : vector<64x2048xf32>
    %16 = tpu.matmul %14, %15, %cst_14 {dimension_numbers = #tpu.dot_dimension_numbers<[1], [0], [0], [1], [0, 0, 1, 1], [], []>} : vector<64x64xbf16>, vector<64x2048xbf16>, vector<64x2048xf32> -> vector<64x2048xf32>
    %c0_15 = arith.constant 0 : index
    %c0_16 = arith.constant 0 : index
    %17 = vector.load %arg6[%c0_15, %c0_16] : memref<1x2048xf32, #tpu.memory_space<vmem>>, vector<1x2048xf32>
    %18 = vector.broadcast %17 : vector<1x2048xf32> to vector<64x2048xf32>
    %19 = arith.addf %16, %18 : vector<64x2048xf32>
    %c0_17 = arith.constant 0 : index
    %c0_18 = arith.constant 0 : index
    %20 = vector.load %arg7[%c0_17, %c0_18] : memref<64x2048xf32, #tpu.memory_space<vmem>>, vector<64x2048xf32>
    tpu.vector_store %arg7[%c0_17, %c0_18], %19 {strides = array<i32>} : memref<64x2048xf32, #tpu.memory_space<vmem>>, vector<64x2048xf32>,
    return
  }
  func.func @transform_0(%arg0: i32) -> (i32, i32) {
    %c0_i32 = arith.constant 0 : i32
    %c0_i32_0 = arith.constant 0 : i32
    %c0_i32_1 = arith.constant 0 : i32
    return %c0_i32, %c0_i32_0 : i32, i32
  }
  func.func @transform_1(%arg0: i32) -> (i32, i32) {
    %c0_i32 = arith.constant 0 : i32
    %c0_i32_0 = arith.constant 0 : i32
    %c0_i32_1 = arith.constant 0 : i32
    return %c0_i32, %c0_i32_0 : i32, i32
  }
  func.func @transform_2(%arg0: i32) -> (i32, i32) {
    %c0_i32 = arith.constant 0 : i32
    %c0_i32_0 = arith.constant 0 : i32
    %c0_i32_1 = arith.constant 0 : i32
    return %c0_i32, %c0_i32_0 : i32, i32
  }
  func.func @transform_3(%arg0: i32) -> (i32, i32) {
    %c0_i32 = arith.constant 0 : i32
    %c0_i32_0 = arith.constant 0 : i32
    %c0_i32_1 = arith.constant 0 : i32
    return %c0_i32, %c0_i32_0 : i32, i32
  }
  func.func @transform_4(%arg0: i32) -> (i32, i32) {
    %c0_i32 = arith.constant 0 : i32
    %c0_i32_0 = arith.constant 0 : i32
    return %c0_i32, %arg0 : i32, i32
  }
  func.func @transform_5(%arg0: i32) -> (i32, i32) {
    %c0_i32 = arith.constant 0 : i32
    %c0_i32_0 = arith.constant 0 : i32
    return %c0_i32, %arg0 : i32, i32
  }
  func.func @transform_6(%arg0: i32) -> (i32, i32) {
    %c0_i32 = arith.constant 0 : i32
    %c0_i32_0 = arith.constant 0 : i32
    return %c0_i32, %arg0 : i32, i32
  }
}

</mosaic_0001>

<bundles_post_ra>
// kernel: gcn_model_forward.1
= control target key start
LH: loop header
LB: loop body
LE: loop exit
PB: predicated region body
PF: predicated region fallthrough
CT: control target
= control target key end

     0   :  { %11 = vsyncpa [#allocation3], 0  ;;  %s2886_s0 = inlined_call_operand.vmem [shape: bf16[64,32], index: 0, kind: input, shape index: {}]   ;;  %s2887_s1 = inlined_call_operand.vmem [shape: bf16[64,64], index: 1, kind: input, shape index: {}]   ;;  %s2888_s2 = inlined_call_operand.vmem [shape: bf16[32,32], index: 2, kind: input, shape index: {}]   ;;  %s2889_s3 = inlined_call_operand.vmem [shape: f32[1,32], index: 3, kind: input, shape index: {}]   ;;  %s2890_s4 = inlined_call_operand.hbm [shape: bf16[32,2048], index: 4, kind: input, shape index: {}]   ;;  %s2891_s5 = inlined_call_operand.hbm [shape: f32[1,2048], index: 5, kind: input, shape index: {}]   ;;  %s2892_s6 = inlined_call_operand.hbm [shape: f32[64,2048], index: 6, kind: output, shape index: {}]  }
   0x1   :  { %12 = vsyncpa [#allocation6], 0 }
   0x2   :  { %13 = vsyncpa [#allocation4], 0  ;;  %s2210_s21 = smov [#allocation2]  }
   0x3   :  { %s27_s22 = sshll.u32 %s2210_s21, 4  ;;  %s28_s22 = int_to_ptr.vmem [resolvable:$true] %s27_s22 }
   0x4   :  { %s2152_s23 = scalar_lea.vmem %s28_s22, 4096  ;;  %p2157_p1 = scmp.lt.s32.totalorder %s28_s22, %s28_s22 }
   0x5   :  { %p2153_p0 = scmp.ne.s32.totalorder %s28_s22, %s2152_s23  ;;  %p2158_p2 = scmp.lt.s32.totalorder %s2152_s23, %s2152_s23 }
   0x7   :  { %p2159_p3 = por %p2158_p2, %p2157_p1 }
   0x9   :  { %p2160_p4 = pnand %p2159_p3, %p2153_p0 }
   0xb   :  { %2163 = shalt.err (!%p2160_p4)
}
   0xc   :  { %s2211_s24 = smov 1024   ;;  %s2212_s25 = smov 64  }
   0xd   :  { %33 = dma.hbm_to_vmem [thread:$0]  %s2890_s4, 4096, %s28_s22, [#allocation3], %s2211_s24, %s2211_s24, %s2212_s25  }
   0xe   :  { %s2213_s28 = smov [#allocation5]  }
   0xf   :  { %s40_s29 = sshll.u32 %s2213_s28, 4  ;;  %s41_s29 = int_to_ptr.vmem [resolvable:$true] %s40_s29 }
  0x10   :  { %s2172_s30 = scalar_lea.vmem %s41_s29, 256  ;;  %p2177_p6 = scmp.lt.s32.totalorder %s41_s29, %s41_s29 }
  0x11   :  { %p2173_p5 = scmp.ne.s32.totalorder %s41_s29, %s2172_s30  ;;  %p2178_p7 = scmp.lt.s32.totalorder %s2172_s30, %s2172_s30 }
  0x13   :  { %p2179_p8 = por %p2178_p7, %p2177_p6 }
  0x15   :  { %p2180_p9 = pnand %p2179_p8, %p2173_p5 }
  0x17   :  { %2183 = shalt.err (!%p2180_p9)
}
  0x18   :  { %43 = dma.hbm_to_vmem [thread:$0]  %s2891_s5, 256, %s41_s29, [#allocation6]  }
  0x19   :  { %2204 = dma.done.wait [#allocation3], 4096  }
  0x1a   :  { %2205 = vsyncadd [#allocation3], 4294963200 }
  0x1b   :  { %2206 = dma.done.wait [#allocation6], 256  }
  0x1c   :  { %2207 = vsyncadd [#allocation6], 4294967040  ;;  %v2133_v0 = vld [vmem:[%s2888_s2 + $0x8] sm:$0xff]   ;;  %v2134_v1 = vld [vmem:[%s2888_s2] sm:$0xff]   ;;  %vm95_vm0 = vcmask 261120   ;;  %vm212_vm1 = vcmask 523264  }
  0x1d   :  { %2097 = vmatprep.subr.bf16.mxu0 %v2133_v0  ;;  %v2135_v2 = vld [vmem:[%s2886_s0] sm:$0xff]   ;;  %v2136_v3 = vld [vmem:[%s2886_s0 + $0x8] sm:$0xff]   ;;  %v2137_v4 = vld [vmem:[%s2886_s0 + $0x10] sm:$0xff]   ;;  %v2214_v38 = vmov 0  }
  0x1e   :  { %2098 = vmatpush3.bf16.msra.mxu0 %v2133_v0  ;;  %2101 = vmatprep.mubr.msk.bf16.mxu0 %vm95_vm0, %v2135_v2  ;;  %v2138_v5 = vld [vmem:[%s2886_s0 + $0x18] sm:$0xff]   ;;  %v2284_v6 = vld [vmem:[%s2887_s1] sm:$0xff]   ;;  %v2291_v19 = vld [vmem:[%s2887_s1 + $0x8] sm:$0xff]  }
  0x1f   :  { %2099 = vmatprep.subr.bf16.mxu0 %v2134_v1  ;;  %2117 = vmatprep.mubr.msk.bf16.mxu1 %vm212_vm1, %v2284_v6  ;;  %v2296_v20 = vld [vmem:[%s2887_s1 + $0x10] sm:$0xff]   ;;  %v2305_v21 = vld [vmem:[%s2887_s1 + $0x18] sm:$0xff]   ;;  %v318_v22 = vld [vmem:[#allocation2 + $0x80] sm:$0xff] }
  0x20   :  { %v326_v23 = vld [vmem:[#allocation2 + $0xc0] sm:$0xff]  ;;  %v319_v24 = vld [vmem:[#allocation2 + $0x88] sm:$0xff]  ;;  %v320_v39 = vld [vmem:[#allocation2 + $0x90] sm:$0xff] }
  0x21   :  { %v2004_v25 = vcombine.high %v318_v22, %v326_v23  ;;  %v327_v26 = vld [vmem:[#allocation2 + $0xc8] sm:$0xff]  ;;  %v2003_v27 = vcombine.low %v318_v22, %v326_v23  ;;  %v302_v30 = vld [vmem:[#allocation2] sm:$0xff]  ;;  %v328_v40 = vld [vmem:[#allocation2 + $0xd0] sm:$0xff] }
  0x22   :  { %2100 = vmatpush3.bf16.msra.mxu0 %v2134_v1  ;;  %v2005_v28 = vcombine.low %v319_v24, %v327_v26  ;;  %v2006_v29 = vcombine.high %v319_v24, %v327_v26  ;;  %v310_v31 = vld [vmem:[#allocation2 + $0x40] sm:$0xff]  ;;  %v303_v32 = vld [vmem:[#allocation2 + $0x8] sm:$0xff]  ;;  %v321_v41 = vld [vmem:[#allocation2 + $0x98] sm:$0xff]  ;;  %v2007_v42 = vcombine.low %v320_v39, %v328_v40  ;;  %v2008_v43 = vcombine.high %v320_v39, %v328_v40 }
  0x23   :  { %518 = vmatprep.subr.bf16.mxu0 %v2004_v25  ;;  %v1988_v33 = vcombine.high %v302_v30, %v310_v31  ;;  %v311_v34 = vld [vmem:[#allocation2 + $0x48] sm:$0xff]  ;;  %v1987_v35 = vcombine.low %v302_v30, %v310_v31  ;;  %v329_v44 = vld [vmem:[#allocation2 + $0xd8] sm:$0xff]  ;;  %v1978_v49 = vld [vmem:[%s2889_s3] ss:$0 sm:$0xff] }
  0x24   :  { %v1989_v36 = vcombine.low %v303_v32, %v311_v34  ;;  %v1990_v37 = vcombine.high %v303_v32, %v311_v34  ;;  %v2009_v45 = vcombine.low %v321_v41, %v329_v44  ;;  %v2010_v46 = vcombine.high %v321_v41, %v329_v44  ;;  %v304_v55 = vld [vmem:[#allocation2 + $0x10] sm:$0xff]  ;;  %v305_v59 = vld [vmem:[#allocation2 + $0x18] sm:$0xff]  ;;  %v306_v30 = vld [vmem:[#allocation2 + $0x20] sm:$0xff] }
  0x25   :  { %2102 = vmatmul.mubr.msk.bf16.vlgmr.msra.gmra.mxu0 %vm95_vm0, %v2136_v3  ;;  %v312_v58 = vld [vmem:[#allocation2 + $0x50] sm:$0xff]  ;;  %v313_v60 = vld [vmem:[#allocation2 + $0x58] sm:$0xff]  ;;  %v2316_v3 = vld [vmem:[#allocation2 + $0xa0] sm:$0xff] }
  0x26   :  { %2105 = vmatprep.mubr.msk.bf16.mxu0 %vm95_vm0, %v2137_v4  ;;  %519 = vmatpush1.bf16.msra.mxu0 %v2003_v27  ;;  %v1992_v1 = vcombine.high %v304_v55, %v312_v58  ;;  %v1994_v2 = vcombine.high %v305_v59, %v313_v60  ;;  %v314_v31 = vld [vmem:[#allocation2 + $0x60] sm:$0xff]  ;;  %v307_v32 = vld [vmem:[#allocation2 + $0x28] sm:$0xff]  ;;  %v324_v39 = vld [vmem:[#allocation2 + $0xb0] sm:$0xff] }
  0x27   :  { %520 = vmatprep.subr.bf16.mxu0 %v1988_v33  ;;  %v315_v33 = vld [vmem:[#allocation2 + $0x68] sm:$0xff]  ;;  %v332_v40 = vld [vmem:[#allocation2 + $0xf0] sm:$0xff]  ;;  %v325_v41 = vld [vmem:[#allocation2 + $0xb8] sm:$0xff] }
  0x28   :  { %v1997_v44 = vcombine.low %v307_v32, %v315_v33 }
  0x2a   :  { %521 = vmatpush1.bf16.msra.mxu0 %v1987_v35 }
  0x2b   :  { %664 = vmatprep.subr.bf16.mxu0 %v2008_v43  ;;  %v1995_v43 = vcombine.low %v306_v30, %v314_v31 }
  0x2d   :  { %2106 = vmatmul.mubr.msk.bf16.gmra.mxu0 %vm95_vm0, %v2138_v5  ;;  %v330_v5 = vld [vmem:[#allocation2 + $0xe0] sm:$0xff] }
  0x2e   :  { %538 = vmatprep.mubr.bf16.mxu0 %v2214_v38  ;;  %v2011_v34 = vcombine.low %v2316_v3, %v330_v5 }
  0xe5   :  { %v2103_v7 = vpop.f32.mrf.mxu0 }
  0xe7   :  { %v142_v8 = vpop.f32.mrf.mxu0 }
  0xe9   :  { %v2104_v9 = vpop.f32.mrf.mxu0 }
  0xea   :  { %v182_v17 = vpack.c.bf16 %v2104_v9, %v2103_v7  ;;  %v323_v7 = vld [vmem:[#allocation2 + $0xa8] sm:$0xff] }
  0xeb   :  { %v145_v10 = vpop.f32.mrf.mxu0 }
  0xec   :  { %v181_v18 = vpack.c.bf16 %v145_v10, %v142_v8  ;;  %v331_v8 = vld [vmem:[#allocation2 + $0xe8] sm:$0xff]  ;;  %v1991_v10 = vcombine.low %v304_v55, %v312_v58 }
  0xed   :  { %v2107_v11 = vpop.f32.mrf.mxu0  ;;  %v2013_v35 = vcombine.low %v323_v7, %v331_v8 }
  0xef   :  { %v158_v12 = vpop.f32.mrf.mxu0 }
  0xf1   :  { %v2108_v13 = vpop.f32.mrf.mxu0 }
  0xf2   :  { %v184_v14 = vpack.c.bf16 %v2108_v13, %v2107_v11  ;;  %v1993_v11 = vcombine.low %v305_v59, %v313_v60  ;;  %v2012_v13 = vcombine.high %v2316_v3, %v330_v5 }
  0xf3   :  { %v161_v15 = vpop.f32.mrf.mxu0 }
  0xf4   :  { %v183_v16 = vpack.c.bf16 %v161_v15, %v158_v12  ;;  %2109 = vmatprep.subr.bf16.mxu1 %v184_v14 }
  0xf5   :  { %2110 = vmatpush3.bf16.msra.mxu1 %v184_v14  ;;  %v2014_v14 = vcombine.high %v323_v7, %v331_v8 }
  0xf6   :  { %2111 = vmatprep.subr.bf16.mxu1 %v183_v16 }
  0xf9   :  { %2112 = vmatpush3.bf16.msra.mxu1 %v183_v16 }
  0xfa   :  { %2113 = vmatprep.subr.bf16.mxu1 %v182_v17 }
  0xfd   :  { %2114 = vmatpush3.bf16.msra.mxu1 %v182_v17 }
  0xfe   :  { %2115 = vmatprep.subr.bf16.mxu1 %v181_v18 }
 0x101   :  { %2116 = vmatpush3.bf16.msra.mxu1 %v181_v18 }
 0x102   :  { %591 = vmatprep.subr.bf16.mxu1 %v2006_v29 }
 0x104   :  { %2118 = vmatmul.mubr.msk.bf16.vlgmr.msra.gmra.mxu1 %vm212_vm1, %v2291_v19 }
 0x105   :  { %2121 = vmatprep.mubr.msk.bf16.mxu1 %vm212_vm1, %v2296_v20  ;;  %592 = vmatpush1.bf16.msra.mxu1 %v2005_v28 }
 0x106   :  { %593 = vmatprep.subr.bf16.mxu1 %v1990_v37  ;;  %v1998_v37 = vcombine.high %v307_v32, %v315_v33 }
 0x109   :  { %594 = vmatpush1.bf16.msra.mxu1 %v1989_v36  ;;  %v1996_v36 = vcombine.high %v306_v30, %v314_v31 }
 0x10a   :  { %737 = vmatprep.subr.bf16.mxu1 %v2010_v46 }
 0x10c   :  { %2122 = vmatmul.mubr.msk.bf16.gmra.mxu1 %vm212_vm1, %v2305_v21 }
 0x10d   :  { %611 = vmatprep.mubr.bf16.mxu1 %v2214_v38 }
 0x1c4   :  { %v2119_v47 = vpop.f32.mrf.mxu1 }
 0x1c5   :  { %v268_v4 = vadd.f32 %v2119_v47, %v1978_v49  ;;  %v308_v47 = vld [vmem:[#allocation2 + $0x30] sm:$0xff] }
 0x1c6   :  { %v259_v48 = vpop.f32.mrf.mxu1 }
 0x1c7   :  { %v260_v51 = vadd.f32 %v1978_v49, %v259_v48  ;;  %v292_v15 = vmax.f32 %v268_v4, 0.0  ;;  %v316_v48 = vld [vmem:[#allocation2 + $0x70] sm:$0xff] }
 0x1c8   :  { %v2120_v50 = vpop.f32.mrf.mxu1  ;;  %v1999_v55 = vcombine.low %v308_v47, %v316_v48 }
 0x1c9   :  { %v290_v56 = vmax.f32 %v260_v51, 0.0  ;;  %v271_v62 = vadd.f32 %v2120_v50, %v1978_v49  ;;  %v317_v50 = vld [vmem:[#allocation2 + $0x78] sm:$0xff]  ;;  %v2015_v51 = vcombine.low %v324_v39, %v332_v40 }
 0x1ca   :  { %v262_v52 = vpop.f32.mrf.mxu1 }
 0x1cb   :  { %v263_v53 = vadd.f32 %v1978_v49, %v262_v52  ;;  %v293_v9 = vmax.f32 %v271_v62, 0.0 }
 0x1cc   :  { %v2123_v54 = vpop.f32.mrf.mxu1 }
 0x1cd   :  { %v291_v57 = vmax.f32 %v263_v53, 0.0  ;;  %v2325_v16 = vpack.c.bf16 %v293_v9, %v292_v15  ;;  %v284_v24 = vadd.f32 %v2123_v54, %v1978_v49  ;;  %v2000_v53 = vcombine.high %v308_v47, %v316_v48 }
 0x1ce   :  { %v275_v61 = vpop.f32.mrf.mxu1 }
 0x1cf   :  { %v2314_v63 = vpack.c.bf16 %v291_v57, %v290_v56  ;;  %v276_v17 = vadd.f32 %v1978_v49, %v275_v61  ;;  %v296_v27 = vmax.f32 %v284_v24, 0.0 }
 0x1d0   :  { %v2124_v0 = vpop.f32.mrf.mxu1 }
 0x1d1   :  { %2019 = vmatmul.mubr.msk.bf16.vlgmr.msra.gmra.mxu0 %vm95_vm0, %v2314_v63  ;;  %2023 = vmatmul.mubr.msk.bf16.vlgmr.msra.gmra.mxu1 %vm95_vm0, %v2314_v63  ;;  %v294_v22 = vmax.f32 %v276_v17, 0.0  ;;  %v287_v25 = vadd.f32 %v2124_v0, %v1978_v49 }
 0x1d2   :  { %548 = vmatprep.mubr.bf16.mxu0 %v2214_v38  ;;  %621 = vmatprep.mubr.bf16.mxu1 %v2214_v38  ;;  %v278_v12 = vpop.f32.mrf.mxu1 }
 0x1d3   :  { %665 = vmatpush1.bf16.msra.mxu0 %v2007_v42  ;;  %738 = vmatpush1.bf16.msra.mxu1 %v2009_v45  ;;  %v279_v18 = vadd.f32 %v1978_v49, %v278_v12  ;;  %v297_v28 = vmax.f32 %v287_v25, 0.0  ;;  %v333_v42 = vld [vmem:[#allocation2 + $0xf8] sm:$0xff]  ;;  %v2016_v45 = vcombine.high %v324_v39, %v332_v40 }
 0x1d4   :  { %666 = vmatprep.subr.bf16.mxu0 %v1992_v1  ;;  %739 = vmatprep.subr.bf16.mxu1 %v1994_v2  ;;  %v2018_v46 = vcombine.high %v325_v41, %v333_v42  ;;  %v309_v49 = vld [vmem:[#allocation2 + $0x38] sm:$0xff]  ;;  %v2017_v52 = vcombine.low %v325_v41, %v333_v42 }
 0x1d5   :  { %v295_v23 = vmax.f32 %v279_v18, 0.0  ;;  %v2341_v29 = vpack.c.bf16 %v297_v28, %v296_v27  ;;  %v2002_v54 = vcombine.high %v309_v49, %v317_v50  ;;  %v2001_v56 = vcombine.low %v309_v49, %v317_v50 }
 0x1d7   :  { %667 = vmatpush1.bf16.msra.mxu0 %v1991_v10  ;;  %740 = vmatpush1.bf16.msra.mxu1 %v1993_v11  ;;  %v2333_v26 = vpack.c.bf16 %v295_v23, %v294_v22 }
 0x1d8   :  { %810 = vmatprep.subr.bf16.mxu0 %v2012_v13  ;;  %883 = vmatprep.subr.bf16.mxu1 %v2014_v14 }
 0x1d9   :  { %2020 = vmatmul.mubr.msk.bf16.gmra.mxu0 %vm95_vm0, %v2325_v16  ;;  %2024 = vmatmul.mubr.msk.bf16.gmra.mxu1 %vm95_vm0, %v2325_v16 }
 0x1da   :  { %558 = vmatprep.mubr.bf16.mxu0 %v2214_v38  ;;  %631 = vmatprep.mubr.bf16.mxu1 %v2214_v38 }
 0x1e1   :  { %2021 = vmatmul.mubr.msk.bf16.gmra.mxu0 %vm95_vm0, %v2333_v26  ;;  %2025 = vmatmul.mubr.msk.bf16.gmra.mxu1 %vm95_vm0, %v2333_v26 }
 0x1e2   :  { %568 = vmatprep.mubr.bf16.mxu0 %v2214_v38  ;;  %641 = vmatprep.mubr.bf16.mxu1 %v2214_v38 }
 0x1e9   :  { %2022 = vmatmul.mubr.msk.bf16.gmra.mxu0 %vm95_vm0, %v2341_v29  ;;  %2026 = vmatmul.mubr.msk.bf16.gmra.mxu1 %vm95_vm0, %v2341_v29 }
 0x1ea   :  { %684 = vmatprep.mubr.bf16.mxu0 %v2214_v38  ;;  %757 = vmatprep.mubr.bf16.mxu1 %v2214_v38 }
 0x1f1   :  { %2027 = vmatmul.mubr.msk.bf16.vlgmr.msra.gmra.mxu0 %vm95_vm0, %v2314_v63  ;;  %2031 = vmatmul.mubr.msk.bf16.vlgmr.msra.gmra.mxu1 %vm95_vm0, %v2314_v63 }
 0x1f2   :  { %694 = vmatprep.mubr.bf16.mxu0 %v2214_v38  ;;  %767 = vmatprep.mubr.bf16.mxu1 %v2214_v38 }
 0x1f3   :  { %811 = vmatpush1.bf16.msra.mxu0 %v2011_v34  ;;  %884 = vmatpush1.bf16.msra.mxu1 %v2013_v35 }
 0x1f4   :  { %812 = vmatprep.subr.bf16.mxu0 %v1996_v36  ;;  %885 = vmatprep.subr.bf16.mxu1 %v1998_v37 }
 0x1f7   :  { %813 = vmatpush1.bf16.msra.mxu0 %v1995_v43  ;;  %886 = vmatpush1.bf16.msra.mxu1 %v1997_v44 }
 0x1f8   :  { %956 = vmatprep.subr.bf16.mxu0 %v2016_v45  ;;  %1029 = vmatprep.subr.bf16.mxu1 %v2018_v46 }
 0x1f9   :  { %2028 = vmatmul.mubr.msk.bf16.gmra.mxu0 %vm95_vm0, %v2325_v16  ;;  %2032 = vmatmul.mubr.msk.bf16.gmra.mxu1 %vm95_vm0, %v2325_v16 }
 0x1fa   :  { %704 = vmatprep.mubr.bf16.mxu0 %v2214_v38  ;;  %777 = vmatprep.mubr.bf16.mxu1 %v2214_v38 }
 0x201   :  { %2029 = vmatmul.mubr.msk.bf16.gmra.mxu0 %vm95_vm0, %v2333_v26  ;;  %2033 = vmatmul.mubr.msk.bf16.gmra.mxu1 %vm95_vm0, %v2333_v26 }
 0x202   :  { %714 = vmatprep.mubr.bf16.mxu0 %v2214_v38  ;;  %787 = vmatprep.mubr.bf16.mxu1 %v2214_v38 }
 0x209   :  { %2030 = vmatmul.mubr.msk.bf16.gmra.mxu0 %vm95_vm0, %v2341_v29  ;;  %2034 = vmatmul.mubr.msk.bf16.gmra.mxu1 %vm95_vm0, %v2341_v29 }
 0x20a   :  { %830 = vmatprep.mubr.bf16.mxu0 %v2214_v38  ;;  %903 = vmatprep.mubr.bf16.mxu1 %v2214_v38 }
 0x211   :  { %2035 = vmatmul.mubr.msk.bf16.vlgmr.msra.gmra.mxu0 %vm95_vm0, %v2314_v63  ;;  %2039 = vmatmul.mubr.msk.bf16.vlgmr.msra.gmra.mxu1 %vm95_vm0, %v2314_v63 }
 0x212   :  { %840 = vmatprep.mubr.bf16.mxu0 %v2214_v38  ;;  %913 = vmatprep.mubr.bf16.mxu1 %v2214_v38 }
 0x213   :  { %957 = vmatpush1.bf16.msra.mxu0 %v2015_v51  ;;  %1030 = vmatpush1.bf16.msra.mxu1 %v2017_v52 }
 0x214   :  { %958 = vmatprep.subr.bf16.mxu0 %v2000_v53  ;;  %1031 = vmatprep.subr.bf16.mxu1 %v2002_v54 }
 0x217   :  { %959 = vmatpush1.bf16.msra.mxu0 %v1999_v55  ;;  %1032 = vmatpush1.bf16.msra.mxu1 %v2001_v56 }
 0x219   :  { %2036 = vmatmul.mubr.msk.bf16.gmra.mxu0 %vm95_vm0, %v2325_v16  ;;  %2040 = vmatmul.mubr.msk.bf16.gmra.mxu1 %vm95_vm0, %v2325_v16 }
 0x21a   :  { %850 = vmatprep.mubr.bf16.mxu0 %v2214_v38  ;;  %923 = vmatprep.mubr.bf16.mxu1 %v2214_v38 }
 0x221   :  { %2037 = vmatmul.mubr.msk.bf16.gmra.mxu0 %vm95_vm0, %v2333_v26  ;;  %2041 = vmatmul.mubr.msk.bf16.gmra.mxu1 %vm95_vm0, %v2333_v26 }
 0x222   :  { %860 = vmatprep.mubr.bf16.mxu0 %v2214_v38  ;;  %933 = vmatprep.mubr.bf16.mxu1 %v2214_v38 }
 0x229   :  { %2038 = vmatmul.mubr.msk.bf16.gmra.mxu0 %vm95_vm0, %v2341_v29  ;;  %2042 = vmatmul.mubr.msk.bf16.gmra.mxu1 %vm95_vm0, %v2341_v29 }
 0x22a   :  { %976 = vmatprep.mubr.bf16.mxu0 %v2214_v38  ;;  %1049 = vmatprep.mubr.bf16.mxu1 %v2214_v38 }
 0x231   :  { %2043 = vmatmul.mubr.msk.bf16.vlgmr.msra.gmra.mxu0 %vm95_vm0, %v2314_v63  ;;  %2047 = vmatmul.mubr.msk.bf16.vlgmr.msra.gmra.mxu1 %vm95_vm0, %v2314_v63 }
 0x232   :  { %986 = vmatprep.mubr.bf16.mxu0 %v2214_v38  ;;  %1059 = vmatprep.mubr.bf16.mxu1 %v2214_v38 }
 0x239   :  { %2044 = vmatmul.mubr.msk.bf16.gmra.mxu0 %vm95_vm0, %v2325_v16  ;;  %2048 = vmatmul.mubr.msk.bf16.gmra.mxu1 %vm95_vm0, %v2325_v16 }
 0x23a   :  { %996 = vmatprep.mubr.bf16.mxu0 %v2214_v38  ;;  %1069 = vmatprep.mubr.bf16.mxu1 %v2214_v38 }
 0x241   :  { %2045 = vmatmul.mubr.msk.bf16.gmra.mxu0 %vm95_vm0, %v2333_v26  ;;  %2049 = vmatmul.mubr.msk.bf16.gmra.mxu1 %vm95_vm0, %v2333_v26 }
 0x242   :  { %1006 = vmatprep.mubr.bf16.mxu0 %v2214_v38  ;;  %1079 = vmatprep.mubr.bf16.mxu1 %v2214_v38 }
 0x249   :  { %2046 = vmatmul.mubr.msk.bf16.gmra.mxu0 %vm95_vm0, %v2341_v29  ;;  %2050 = vmatmul.mubr.msk.bf16.gmra.mxu1 %vm95_vm0, %v2341_v29 }
 0x24a   :  { %1270 = vmatprep.mubr.bf16.mxu0 %v2214_v38  ;;  %1343 = vmatprep.mubr.bf16.mxu1 %v2214_v38 }
 0x291   :  { %v2422_v57 = vpop.f32.mrf.mxu0  ;;  %v2424_v58 = vpop.f32.mrf.mxu1 }
 0x293   :  { %v2426_v59 = vpop.f32.mrf.mxu0  ;;  %v2428_v60 = vpop.f32.mrf.mxu1 }
 0x295   :  { %v2430_v61 = vpop.f32.mrf.mxu0  ;;  %v2432_v62 = vpop.f32.mrf.mxu1 }
 0x296   :  { %v1090_v56 = vpack.c.bf16 %v2430_v61, %v2422_v57 }
 0x297   :  { %v2434_v63 = vpop.f32.mrf.mxu0  ;;  %v2436_v0 = vpop.f32.mrf.mxu1 }
 0x298   :  { %v1091_v52 = vpack.c.bf16 %v2434_v63, %v2426_v59  ;;  %v1093_v53 = vpack.c.bf16 %v2436_v0, %v2428_v60 }
 0x299   :  { %v550_v1 = vpop.f32.mrf.mxu0  ;;  %v623_v2 = vpop.f32.mrf.mxu1 }
 0x29b   :  { %v552_v3 = vpop.f32.mrf.mxu0  ;;  %v625_v4 = vpop.f32.mrf.mxu1 }
 0x29d   :  { %v554_v5 = vpop.f32.mrf.mxu0  ;;  %v627_v7 = vpop.f32.mrf.mxu1 }
 0x29e   :  { %v1106_v48 = vpack.c.bf16 %v554_v5, %v550_v1  ;;  %v1108_v49 = vpack.c.bf16 %v627_v7, %v623_v2  ;;  %v1092_v1 = vpack.c.bf16 %v2432_v62, %v2424_v58 }
 0x29f   :  { %v556_v8 = vpop.f32.mrf.mxu0  ;;  %v629_v9 = vpop.f32.mrf.mxu1 }
 0x2a0   :  { %v1107_v44 = vpack.c.bf16 %v556_v8, %v552_v3  ;;  %v1109_v45 = vpack.c.bf16 %v629_v9, %v625_v4 }
 0x2a1   :  { %v560_v10 = vpop.f32.mrf.mxu0  ;;  %v633_v11 = vpop.f32.mrf.mxu1 }
 0x2a3   :  { %v562_v12 = vpop.f32.mrf.mxu0  ;;  %v635_v13 = vpop.f32.mrf.mxu1 }
 0x2a5   :  { %v564_v14 = vpop.f32.mrf.mxu0  ;;  %v637_v15 = vpop.f32.mrf.mxu1 }
 0x2a6   :  { %v1122_v40 = vpack.c.bf16 %v564_v14, %v560_v10  ;;  %v1124_v41 = vpack.c.bf16 %v637_v15, %v633_v11 }
 0x2a7   :  { %v566_v16 = vpop.f32.mrf.mxu0  ;;  %v639_v17 = vpop.f32.mrf.mxu1 }
 0x2a8   :  { %v1123_v35 = vpack.c.bf16 %v566_v16, %v562_v12  ;;  %v1125_v36 = vpack.c.bf16 %v639_v17, %v635_v13 }
 0x2a9   :  { %v570_v18 = vpop.f32.mrf.mxu0  ;;  %v643_v22 = vpop.f32.mrf.mxu1 }
 0x2ab   :  { %v572_v23 = vpop.f32.mrf.mxu0  ;;  %v645_v24 = vpop.f32.mrf.mxu1 }
 0x2ad   :  { %v574_v25 = vpop.f32.mrf.mxu0  ;;  %v647_v26 = vpop.f32.mrf.mxu1 }
 0x2ae   :  { %v1138_v31 = vpack.c.bf16 %v574_v25, %v570_v18  ;;  %v1140_v32 = vpack.c.bf16 %v647_v26, %v643_v22 }
 0x2af   :  { %v576_v27 = vpop.f32.mrf.mxu0  ;;  %v649_v28 = vpop.f32.mrf.mxu1 }
 0x2b0   :  { %v1139_v29 = vpack.c.bf16 %v576_v27, %v572_v23  ;;  %v1141_v30 = vpack.c.bf16 %v649_v28, %v645_v24 }
 0x2b1   :  { %v2438_v33 = vpop.f32.mrf.mxu0  ;;  %v2440_v34 = vpop.f32.mrf.mxu1 }
 0x2b2   :  { %1246 = vmatprep.subr.bf16.mxu0 %v1139_v29  ;;  %1319 = vmatprep.subr.bf16.mxu1 %v1141_v30 }
 0x2b3   :  { %v2442_v37 = vpop.f32.mrf.mxu0  ;;  %v2444_v39 = vpop.f32.mrf.mxu1  ;;  %1247 = vmatpush1.bf16.msra.mxu0 %v1138_v31  ;;  %1320 = vmatpush1.bf16.msra.mxu1 %v1140_v32 }
 0x2b4   :  { %1248 = vmatprep.subr.bf16.mxu0 %v1123_v35  ;;  %1321 = vmatprep.subr.bf16.mxu1 %v1125_v36 }
 0x2b5   :  { %v2446_v42 = vpop.f32.mrf.mxu0  ;;  %v2448_v43 = vpop.f32.mrf.mxu1 }
 0x2b7   :  { %v2450_v46 = vpop.f32.mrf.mxu0  ;;  %v2452_v47 = vpop.f32.mrf.mxu1  ;;  %1249 = vmatpush1.bf16.msra.mxu0 %v1122_v40  ;;  %1322 = vmatpush1.bf16.msra.mxu1 %v1124_v41 }
 0x2b8   :  { %1250 = vmatprep.subr.bf16.mxu0 %v1107_v44  ;;  %1323 = vmatprep.subr.bf16.mxu1 %v1109_v45 }
 0x2b9   :  { %v2454_v50 = vpop.f32.mrf.mxu0  ;;  %v2456_v51 = vpop.f32.mrf.mxu1 }
 0x2bb   :  { %v2462_v54 = vpop.f32.mrf.mxu0  ;;  %v2464_v55 = vpop.f32.mrf.mxu1  ;;  %1251 = vmatpush1.bf16.msra.mxu0 %v1106_v48  ;;  %1324 = vmatpush1.bf16.msra.mxu1 %v1108_v49  ;;  %v1095_v49 = vpack.c.bf16 %v2450_v46, %v2442_v37 }
 0x2bc   :  { %1252 = vmatprep.subr.bf16.mxu0 %v1091_v52  ;;  %1325 = vmatprep.subr.bf16.mxu1 %v1093_v53  ;;  %v1097_v52 = vpack.c.bf16 %v2452_v47, %v2444_v39 }
 0x2bd   :  { %v2470_v2 = vpop.f32.mrf.mxu0  ;;  %v2472_v59 = vpop.f32.mrf.mxu1 }
 0x2be   :  { %v1110_v41 = vpack.c.bf16 %v2470_v2, %v2454_v50  ;;  %v1112_v44 = vpack.c.bf16 %v2472_v59, %v2456_v51  ;;  %v1094_v50 = vpack.c.bf16 %v2446_v42, %v2438_v33  ;;  %v1096_v51 = vpack.c.bf16 %v2448_v43, %v2440_v34 }
 0x2bf   :  { %v702_v63 = vpop.f32.mrf.mxu0  ;;  %v775_v60 = vpop.f32.mrf.mxu1  ;;  %1253 = vmatpush1.bf16.msra.mxu0 %v1090_v56  ;;  %1326 = vmatpush1.bf16.msra.mxu1 %v1092_v1 }
 0x2c0   :  { %v1111_v32 = vpack.c.bf16 %v702_v63, %v2462_v54  ;;  %v1113_v35 = vpack.c.bf16 %v775_v60, %v2464_v55 }
 0x2c1   :  { %v706_v0 = vpop.f32.mrf.mxu0  ;;  %v779_v3 = vpop.f32.mrf.mxu1 }
 0x2c2   :  { %2051 = vmatmul.mubr.msk.bf16.vlgmr.msra.gmra.mxu0 %vm212_vm1, %v2284_v6  ;;  %2055 = vmatmul.mubr.msk.bf16.vlgmr.msra.gmra.mxu1 %vm212_vm1, %v2284_v6 }
 0x2c3   :  { %v708_v57 = vpop.f32.mrf.mxu0  ;;  %v781_v61 = vpop.f32.mrf.mxu1  ;;  %1280 = vmatprep.mubr.bf16.mxu0 %v2214_v38  ;;  %1353 = vmatprep.mubr.bf16.mxu1 %v2214_v38 }
 0x2c5   :  { %v710_v58 = vpop.f32.mrf.mxu0  ;;  %v783_v62 = vpop.f32.mrf.mxu1 }
 0x2c6   :  { %v1126_v28 = vpack.c.bf16 %v710_v58, %v706_v0  ;;  %v1128_v29 = vpack.c.bf16 %v783_v62, %v779_v3 }
 0x2c7   :  { %v712_v4 = vpop.f32.mrf.mxu0  ;;  %v785_v5 = vpop.f32.mrf.mxu1 }
 0x2c8   :  { %v1127_v24 = vpack.c.bf16 %v712_v4, %v708_v57  ;;  %v1129_v25 = vpack.c.bf16 %v785_v5, %v781_v61 }
 0x2c9   :  { %v716_v7 = vpop.f32.mrf.mxu0  ;;  %v789_v8 = vpop.f32.mrf.mxu1 }
 0x2ca   :  { %2052 = vmatmul.mubr.msk.bf16.gmra.mxu0 %vm212_vm1, %v2291_v19  ;;  %2056 = vmatmul.mubr.msk.bf16.gmra.mxu1 %vm212_vm1, %v2291_v19 }
 0x2cb   :  { %v718_v9 = vpop.f32.mrf.mxu0  ;;  %v791_v10 = vpop.f32.mrf.mxu1  ;;  %1290 = vmatprep.mubr.bf16.mxu0 %v2214_v38  ;;  %1363 = vmatprep.mubr.bf16.mxu1 %v2214_v38 }
 0x2cd   :  { %v720_v11 = vpop.f32.mrf.mxu0  ;;  %v793_v12 = vpop.f32.mrf.mxu1 }
 0x2ce   :  { %v1142_v17 = vpack.c.bf16 %v720_v11, %v716_v7  ;;  %v1144_v18 = vpack.c.bf16 %v793_v12, %v789_v8 }
 0x2cf   :  { %v722_v13 = vpop.f32.mrf.mxu0  ;;  %v795_v14 = vpop.f32.mrf.mxu1 }
 0x2d0   :  { %v1143_v15 = vpack.c.bf16 %v722_v13, %v718_v9  ;;  %v1145_v16 = vpack.c.bf16 %v795_v14, %v791_v10 }
 0x2d1   :  { %v2486_v22 = vpop.f32.mrf.mxu0  ;;  %v2488_v23 = vpop.f32.mrf.mxu1 }
 0x2d2   :  { %1392 = vmatprep.subr.bf16.mxu0 %v1143_v15  ;;  %1465 = vmatprep.subr.bf16.mxu1 %v1145_v16 }
 0x2d3   :  { %v2490_v26 = vpop.f32.mrf.mxu0  ;;  %v2492_v27 = vpop.f32.mrf.mxu1  ;;  %1393 = vmatpush1.bf16.msra.mxu0 %v1142_v17  ;;  %1466 = vmatpush1.bf16.msra.mxu1 %v1144_v18 }
 0x2d4   :  { %1394 = vmatprep.subr.bf16.mxu0 %v1127_v24  ;;  %1467 = vmatprep.subr.bf16.mxu1 %v1129_v25 }
 0x2d5   :  { %v2494_v30 = vpop.f32.mrf.mxu0  ;;  %v2496_v31 = vpop.f32.mrf.mxu1  ;;  %2053 = vmatmul.mubr.msk.bf16.gmra.mxu0 %vm212_vm1, %v2296_v20  ;;  %2057 = vmatmul.mubr.msk.bf16.gmra.mxu1 %vm212_vm1, %v2296_v20 }
 0x2d6   :  { %1300 = vmatprep.mubr.bf16.mxu0 %v2214_v38  ;;  %1373 = vmatprep.mubr.bf16.mxu1 %v2214_v38 }
 0x2d7   :  { %v2506_v36 = vpop.f32.mrf.mxu0  ;;  %v2508_v40 = vpop.f32.mrf.mxu1  ;;  %1395 = vmatpush1.bf16.msra.mxu0 %v1126_v28  ;;  %1468 = vmatpush1.bf16.msra.mxu1 %v1128_v29 }
 0x2d8   :  { %1396 = vmatprep.subr.bf16.mxu0 %v1111_v32  ;;  %1469 = vmatprep.subr.bf16.mxu1 %v1113_v35 }
 0x2d9   :  { %v2514_v45 = vpop.f32.mrf.mxu0  ;;  %v2516_v48 = vpop.f32.mrf.mxu1 }
 0x2db   :  { %v2522_v53 = vpop.f32.mrf.mxu0  ;;  %v2524_v54 = vpop.f32.mrf.mxu1  ;;  %1397 = vmatpush1.bf16.msra.mxu0 %v1110_v41  ;;  %1470 = vmatpush1.bf16.msra.mxu1 %v1112_v44  ;;  %v1099_v44 = vpack.c.bf16 %v2506_v36, %v2490_v26 }
 0x2dc   :  { %1398 = vmatprep.subr.bf16.mxu0 %v1095_v49  ;;  %1471 = vmatprep.subr.bf16.mxu1 %v1097_v52  ;;  %v1101_v49 = vpack.c.bf16 %v2508_v40, %v2492_v27 }
 0x2dd   :  { %v2530_v55 = vpop.f32.mrf.mxu0  ;;  %v2532_v37 = vpop.f32.mrf.mxu1  ;;  %2054 = vmatmul.mubr.msk.bf16.gmra.mxu0 %vm212_vm1, %v2305_v21  ;;  %2058 = vmatmul.mubr.msk.bf16.gmra.mxu1 %vm212_vm1, %v2305_v21 }
 0x2de   :  { %1416 = vmatprep.mubr.bf16.mxu0 %v2214_v38  ;;  %1489 = vmatprep.mubr.bf16.mxu1 %v2214_v38  ;;  %v1114_v29 = vpack.c.bf16 %v2530_v55, %v2514_v45  ;;  %v1116_v32 = vpack.c.bf16 %v2532_v37, %v2516_v48  ;;  %v1098_v45 = vpack.c.bf16 %v2494_v30, %v2486_v22 }
 0x2df   :  { %v848_v39 = vpop.f32.mrf.mxu0  ;;  %v921_v46 = vpop.f32.mrf.mxu1  ;;  %1399 = vmatpush1.bf16.msra.mxu0 %v1094_v50  ;;  %1472 = vmatpush1.bf16.msra.mxu1 %v1096_v51  ;;  %v1100_v48 = vpack.c.bf16 %v2496_v31, %v2488_v23 }
 0x2e0   :  { %v1115_v18 = vpack.c.bf16 %v848_v39, %v2522_v53  ;;  %v1117_v24 = vpack.c.bf16 %v921_v46, %v2524_v54 }
 0x2e1   :  { %v852_v33 = vpop.f32.mrf.mxu0  ;;  %v925_v34 = vpop.f32.mrf.mxu1 }
 0x2e3   :  { %v854_v42 = vpop.f32.mrf.mxu0  ;;  %v927_v43 = vpop.f32.mrf.mxu1 }
 0x2e5   :  { %v856_v47 = vpop.f32.mrf.mxu0  ;;  %v929_v56 = vpop.f32.mrf.mxu1  ;;  %2059 = vmatmul.mubr.msk.bf16.vlgmr.msra.gmra.mxu0 %vm212_vm1, %v2284_v6  ;;  %2063 = vmatmul.mubr.msk.bf16.vlgmr.msra.gmra.mxu1 %vm212_vm1, %v2284_v6 }
 0x2e6   :  { %1426 = vmatprep.mubr.bf16.mxu0 %v2214_v38  ;;  %1499 = vmatprep.mubr.bf16.mxu1 %v2214_v38  ;;  %v1130_v14 = vpack.c.bf16 %v856_v47, %v852_v33  ;;  %v1132_v15 = vpack.c.bf16 %v929_v56, %v925_v34 }
 0x2e7   :  { %v858_v1 = vpop.f32.mrf.mxu0  ;;  %v931_v2 = vpop.f32.mrf.mxu1 }
 0x2e8   :  { %v1131_v10 = vpack.c.bf16 %v858_v1, %v854_v42  ;;  %v1133_v11 = vpack.c.bf16 %v931_v2, %v927_v43 }
 0x2e9   :  { %v862_v59 = vpop.f32.mrf.mxu0  ;;  %v935_v63 = vpop.f32.mrf.mxu1 }
 0x2eb   :  { %v864_v60 = vpop.f32.mrf.mxu0  ;;  %v937_v0 = vpop.f32.mrf.mxu1 }
 0x2ed   :  { %v866_v3 = vpop.f32.mrf.mxu0  ;;  %v939_v57 = vpop.f32.mrf.mxu1  ;;  %2060 = vmatmul.mubr.msk.bf16.gmra.mxu0 %vm212_vm1, %v2291_v19  ;;  %2064 = vmatmul.mubr.msk.bf16.gmra.mxu1 %vm212_vm1, %v2291_v19 }
 0x2ee   :  { %1436 = vmatprep.mubr.bf16.mxu0 %v2214_v38  ;;  %1509 = vmatprep.mubr.bf16.mxu1 %v2214_v38  ;;  %v1146_v5 = vpack.c.bf16 %v866_v3, %v862_v59  ;;  %v1148_v7 = vpack.c.bf16 %v939_v57, %v935_v63 }
 0x2ef   :  { %v868_v61 = vpop.f32.mrf.mxu0  ;;  %v941_v58 = vpop.f32.mrf.mxu1 }
 0x2f0   :  { %v1147_v62 = vpack.c.bf16 %v868_v61, %v864_v60  ;;  %v1149_v4 = vpack.c.bf16 %v941_v58, %v937_v0 }
 0x2f1   :  { %v2552_v8 = vpop.f32.mrf.mxu0  ;;  %v2554_v9 = vpop.f32.mrf.mxu1 }
 0x2f2   :  { %1538 = vmatprep.subr.bf16.mxu0 %v1147_v62  ;;  %1611 = vmatprep.subr.bf16.mxu1 %v1149_v4 }
 0x2f3   :  { %v2556_v12 = vpop.f32.mrf.mxu0  ;;  %v2558_v13 = vpop.f32.mrf.mxu1  ;;  %1539 = vmatpush1.bf16.msra.mxu0 %v1146_v5  ;;  %1612 = vmatpush1.bf16.msra.mxu1 %v1148_v7 }
 0x2f4   :  { %1540 = vmatprep.subr.bf16.mxu0 %v1131_v10  ;;  %1613 = vmatprep.subr.bf16.mxu1 %v1133_v11  ;;  %v2143_v10 = vld [vmem:[%s2887_s1] sm:$0xff]   ;;  %s2215_s1 = smov [#allocation7]  }
 0x2f5   :  { %v2560_v16 = vpop.f32.mrf.mxu0  ;;  %v2562_v17 = vpop.f32.mrf.mxu1  ;;  %2061 = vmatmul.mubr.msk.bf16.gmra.mxu0 %vm212_vm1, %v2296_v20  ;;  %2065 = vmatmul.mubr.msk.bf16.gmra.mxu1 %vm212_vm1, %v2296_v20  ;;  %s1955_s28 = sshll.u32 %s2215_s1, 4  ;;  %s1956_s28 = int_to_ptr.vmem [resolvable:$true] %s1955_s28 }
 0x2f6   :  { %1446 = vmatprep.mubr.bf16.mxu0 %v2214_v38  ;;  %1519 = vmatprep.mubr.bf16.mxu1 %v2214_v38  ;;  %v1102_v5 = vpack.c.bf16 %v2560_v16, %v2552_v8  ;;  %v1104_v7 = vpack.c.bf16 %v2562_v17, %v2554_v9  ;;  %s2184_s29 = scalar_lea.vmem %s1956_s28, 16384  ;;  %p2189_p11 = scmp.lt.s32.totalorder %s1956_s28, %s1956_s28 }
 0x2f7   :  { %v2572_v25 = vpop.f32.mrf.mxu0  ;;  %v2574_v28 = vpop.f32.mrf.mxu1  ;;  %1541 = vmatpush1.bf16.msra.mxu0 %v1130_v14  ;;  %1614 = vmatpush1.bf16.msra.mxu1 %v1132_v15  ;;  %p2185_p10 = scmp.ne.s32.totalorder %s1956_s28, %s2184_s29  ;;  %p2190_p12 = scmp.lt.s32.totalorder %s2184_s29, %s2184_s29 }
 0x2f8   :  { %1542 = vmatprep.subr.bf16.mxu0 %v1115_v18  ;;  %1615 = vmatprep.subr.bf16.mxu1 %v1117_v24  ;;  %v1103_v62 = vpack.c.bf16 %v2572_v25, %v2556_v12  ;;  %v1105_v4 = vpack.c.bf16 %v2574_v28, %v2558_v13  ;;  %v2665_v12 = vld [vmem:[#allocation5] sm:$0xff] }
 0x2f9   :  { %v2580_v35 = vpop.f32.mrf.mxu0  ;;  %v2582_v41 = vpop.f32.mrf.mxu1  ;;  %p2191_p13 = por %p2190_p12, %p2189_p11 }
 0x2fb   :  { %v2588_v52 = vpop.f32.mrf.mxu0  ;;  %v2590_v53 = vpop.f32.mrf.mxu1  ;;  %1543 = vmatpush1.bf16.msra.mxu0 %v1114_v29  ;;  %1616 = vmatpush1.bf16.msra.mxu1 %v1116_v32  ;;  %p2192_p0 = pnand %p2191_p13, %p2185_p10 }
 0x2fc   :  { %1544 = vmatprep.subr.bf16.mxu0 %v1099_v44  ;;  %1617 = vmatprep.subr.bf16.mxu1 %v1101_v49 }
 0x2fd   :  { %v992_v54 = vpop.f32.mrf.mxu0  ;;  %v1065_v50 = vpop.f32.mrf.mxu1  ;;  %2062 = vmatmul.mubr.msk.bf16.gmra.mxu0 %vm212_vm1, %v2305_v21  ;;  %2066 = vmatmul.mubr.msk.bf16.gmra.mxu1 %vm212_vm1, %v2305_v21 }
 0x2fe   :  { %1562 = vmatprep.mubr.bf16.mxu0 %v2214_v38  ;;  %1635 = vmatprep.mubr.bf16.mxu1 %v2214_v38  ;;  %v1118_v61 = vpack.c.bf16 %v992_v54, %v2580_v35  ;;  %v1120_v58 = vpack.c.bf16 %v1065_v50, %v2582_v41 }
 0x2ff   :  { %v994_v26 = vpop.f32.mrf.mxu0  ;;  %v1067_v27 = vpop.f32.mrf.mxu1  ;;  %1545 = vmatpush1.bf16.msra.mxu0 %v1098_v45  ;;  %1618 = vmatpush1.bf16.msra.mxu1 %v1100_v48 }
 0x300   :  { %v1119_v3 = vpack.c.bf16 %v994_v26, %v2588_v52  ;;  %v1121_v57 = vpack.c.bf16 %v1067_v27, %v2590_v53 }
 0x301   :  { %v998_v22 = vpop.f32.mrf.mxu0  ;;  %v1071_v30 = vpop.f32.mrf.mxu1 }
 0x303   :  { %v1000_v36 = vpop.f32.mrf.mxu0  ;;  %v1073_v23 = vpop.f32.mrf.mxu1 }
 0x305   :  { %v1002_v31 = vpop.f32.mrf.mxu0  ;;  %v1075_v40 = vpop.f32.mrf.mxu1  ;;  %2067 = vmatmul.mubr.msk.bf16.vlgmr.msra.gmra.mxu0 %vm212_vm1, %v2284_v6  ;;  %2071 = vmatmul.mubr.msk.bf16.vlgmr.msra.gmra.mxu1 %vm212_vm1, %v2284_v6 }
 0x306   :  { %1572 = vmatprep.mubr.bf16.mxu0 %v2214_v38  ;;  %1645 = vmatprep.mubr.bf16.mxu1 %v2214_v38  ;;  %v1134_v60 = vpack.c.bf16 %v1002_v31, %v998_v22  ;;  %v1136_v0 = vpack.c.bf16 %v1075_v40, %v1071_v30 }
 0x307   :  { %v1004_v51 = vpop.f32.mrf.mxu0  ;;  %v1077_v55 = vpop.f32.mrf.mxu1 }
 0x308   :  { %v1135_v59 = vpack.c.bf16 %v1004_v51, %v1000_v36  ;;  %v1137_v63 = vpack.c.bf16 %v1077_v55, %v1073_v23 }
 0x309   :  { %v1008_v37 = vpop.f32.mrf.mxu0  ;;  %v1081_v39 = vpop.f32.mrf.mxu1 }
 0x30b   :  { %v1010_v46 = vpop.f32.mrf.mxu0  ;;  %v1083_v33 = vpop.f32.mrf.mxu1 }
 0x30d   :  { %v1012_v34 = vpop.f32.mrf.mxu0  ;;  %v1085_v42 = vpop.f32.mrf.mxu1  ;;  %2068 = vmatmul.mubr.msk.bf16.gmra.mxu0 %vm212_vm1, %v2291_v19  ;;  %2072 = vmatmul.mubr.msk.bf16.gmra.mxu1 %vm212_vm1, %v2291_v19 }
 0x30e   :  { %1582 = vmatprep.mubr.bf16.mxu0 %v2214_v38  ;;  %1655 = vmatprep.mubr.bf16.mxu1 %v2214_v38  ;;  %v1150_v1 = vpack.c.bf16 %v1012_v34, %v1008_v37  ;;  %v1152_v2 = vpack.c.bf16 %v1085_v42, %v1081_v39 }
 0x30f   :  { %v1014_v6 = vpop.f32.mrf.mxu0  ;;  %v1087_v43 = vpop.f32.mrf.mxu1 }
 0x310   :  { %v1151_v47 = vpack.c.bf16 %v1014_v6, %v1010_v46  ;;  %v1153_v56 = vpack.c.bf16 %v1087_v43, %v1083_v33 }
 0x312   :  { %1684 = vmatprep.subr.bf16.mxu0 %v1151_v47  ;;  %1757 = vmatprep.subr.bf16.mxu1 %v1153_v56 }
 0x313   :  { %1685 = vmatpush1.bf16.msra.mxu0 %v1150_v1  ;;  %1758 = vmatpush1.bf16.msra.mxu1 %v1152_v2 }
 0x314   :  { %1686 = vmatprep.subr.bf16.mxu0 %v1135_v59  ;;  %1759 = vmatprep.subr.bf16.mxu1 %v1137_v63 }
 0x315   :  { %2069 = vmatmul.mubr.msk.bf16.gmra.mxu0 %vm212_vm1, %v2296_v20  ;;  %2073 = vmatmul.mubr.msk.bf16.gmra.mxu1 %vm212_vm1, %v2296_v20 }
 0x316   :  { %1592 = vmatprep.mubr.bf16.mxu0 %v2214_v38  ;;  %1665 = vmatprep.mubr.bf16.mxu1 %v2214_v38 }
 0x317   :  { %1687 = vmatpush1.bf16.msra.mxu0 %v1134_v60  ;;  %1760 = vmatpush1.bf16.msra.mxu1 %v1136_v0 }
 0x318   :  { %1688 = vmatprep.subr.bf16.mxu0 %v1119_v3  ;;  %1761 = vmatprep.subr.bf16.mxu1 %v1121_v57 }
 0x31b   :  { %1689 = vmatpush1.bf16.msra.mxu0 %v1118_v61  ;;  %1762 = vmatpush1.bf16.msra.mxu1 %v1120_v58 }
 0x31c   :  { %1690 = vmatprep.subr.bf16.mxu0 %v1103_v62  ;;  %1763 = vmatprep.subr.bf16.mxu1 %v1105_v4 }
 0x31d   :  { %2070 = vmatmul.mubr.msk.bf16.gmra.mxu0 %vm212_vm1, %v2305_v21  ;;  %2074 = vmatmul.mubr.msk.bf16.gmra.mxu1 %vm212_vm1, %v2305_v21 }
 0x31e   :  { %1708 = vmatprep.mubr.bf16.mxu0 %v2214_v38  ;;  %1781 = vmatprep.mubr.bf16.mxu1 %v2214_v38 }
 0x31f   :  { %1691 = vmatpush1.bf16.msra.mxu0 %v1102_v5  ;;  %1764 = vmatpush1.bf16.msra.mxu1 %v1104_v7 }
 0x325   :  { %2075 = vmatmul.mubr.msk.bf16.vlgmr.msra.gmra.mxu0 %vm212_vm1, %v2143_v10  ;;  %2079 = vmatmul.mubr.msk.bf16.vlgmr.msra.gmra.mxu1 %vm212_vm1, %v2143_v10 }
 0x326   :  { %1718 = vmatprep.mubr.bf16.mxu0 %v2214_v38  ;;  %1791 = vmatprep.mubr.bf16.mxu1 %v2214_v38 }
 0x32d   :  { %2076 = vmatmul.mubr.msk.bf16.gmra.mxu0 %vm212_vm1, %v2291_v19  ;;  %2080 = vmatmul.mubr.msk.bf16.gmra.mxu1 %vm212_vm1, %v2291_v19  ;;  %v1158_v19 = vlaneseq }
 0x32e   :  { %1728 = vmatprep.mubr.bf16.mxu0 %v2214_v38  ;;  %1801 = vmatprep.mubr.bf16.mxu1 %v2214_v38 }
 0x32f   :  { %v2661_v8 = vshrl.u32 %v1158_v19, 7 }
 0x331   :  { %v1160_v9 = vsub.s32 0, %v2661_v8  ;;  %v1168_v11 = vsub.s32 2, %v2661_v8  ;;  %v1172_v13 = vsub.s32 3, %v2661_v8  ;;  %v1176_v10 = vsub.s32 4, %v2661_v8 }
 0x332   :  { %v1184_v19 = vsub.s32 6, %v2661_v8 }
 0x333   :  { %v2687_v15 = vrot.slane %v2665_v12, %v1172_v13 }
 0x335   :  { %2077 = vmatmul.mubr.msk.bf16.gmra.mxu0 %vm212_vm1, %v2296_v20  ;;  %2081 = vmatmul.mubr.msk.bf16.gmra.mxu1 %vm212_vm1, %v2296_v20  ;;  %v1164_v20 = vsub.s32 1, %v2661_v8 }
 0x336   :  { %1738 = vmatprep.mubr.bf16.mxu0 %v2214_v38  ;;  %1811 = vmatprep.mubr.bf16.mxu1 %v2214_v38  ;;  %v2672_v38 = vrot.slane %v2665_v12, %v1160_v9 }
 0x337   :  { %v2682_v14 = vrot.slane %v2665_v12, %v1164_v20 }
 0x33d   :  { %2078 = vmatmul.mubr.msk.bf16.gmra.mxu0 %vm212_vm1, %v2305_v21  ;;  %2082 = vmatmul.mubr.msk.bf16.gmra.mxu1 %vm212_vm1, %v2305_v21  ;;  %v2677_v21 = vrot.slane %v2665_v12, %v1168_v11 }
 0x382   :  { %v1272_v16 = vpop.f32.mrf.mxu0  ;;  %v1345_v17 = vpop.f32.mrf.mxu1 }
 0x383   :  { %v1273_v18 = vadd.f32 %v1272_v16, %v2672_v38  ;;  %v1346_v24 = vadd.f32 %v1345_v17, %v2677_v21 }
 0x384   :  { %v1274_v25 = vpop.f32.mrf.mxu0  ;;  %v1347_v28 = vpop.f32.mrf.mxu1 }
 0x385   :  { %1822 = vst [vmem:[#allocation7] sm:$0xff] %v1273_v18  ;;  %1824 = vst [vmem:[#allocation7 + $0x10] sm:$0xff] %v1346_v24  ;;  %v1275_v29 = vadd.f32 %v1274_v25, %v2682_v14  ;;  %v1348_v32 = vadd.f32 %v1347_v28, %v2687_v15  ;;  %v1180_v25 = vsub.s32 5, %v2661_v8  ;;  %v1188_v28 = vsub.s32 7, %v2661_v8 }
 0x386   :  { %v1276_v35 = vpop.f32.mrf.mxu0  ;;  %v1349_v41 = vpop.f32.mrf.mxu1 }
 0x387   :  { %1823 = vst [vmem:[#allocation7 + $0x8] sm:$0xff] %v1275_v29  ;;  %1825 = vst [vmem:[#allocation7 + $0x18] sm:$0xff] %v1348_v32  ;;  %v1277_v44 = vadd.f32 %v1276_v35, %v2672_v38  ;;  %v1350_v49 = vadd.f32 %v1349_v41, %v2677_v21 }
 0x388   :  { %v1278_v52 = vpop.f32.mrf.mxu0  ;;  %v1351_v53 = vpop.f32.mrf.mxu1 }
 0x389   :  { %1838 = vst [vmem:[#allocation7 + $0x80] sm:$0xff] %v1277_v44  ;;  %1840 = vst [vmem:[#allocation7 + $0x90] sm:$0xff] %v1350_v49  ;;  %v1279_v45 = vadd.f32 %v1278_v52, %v2682_v14  ;;  %v1352_v48 = vadd.f32 %v1351_v53, %v2687_v15  ;;  %v2726_v44 = vrot.slane %v2665_v12, %v1176_v10 }
 0x38a   :  { %v1282_v54 = vpop.f32.mrf.mxu0  ;;  %v1355_v50 = vpop.f32.mrf.mxu1  ;;  %v2731_v49 = vrot.slane %v2665_v12, %v1184_v19 }
 0x38b   :  { %1839 = vst [vmem:[#allocation7 + $0x88] sm:$0xff] %v1279_v45  ;;  %1841 = vst [vmem:[#allocation7 + $0x98] sm:$0xff] %v1352_v48  ;;  %v1283_v26 = vadd.f32 %v1282_v54, %v2672_v38  ;;  %v1356_v27 = vadd.f32 %v1355_v50, %v2677_v21  ;;  %v2743_v48 = vrot.slane %v2665_v12, %v1188_v28 }
 0x38c   :  { %v1284_v22 = vpop.f32.mrf.mxu0  ;;  %v1357_v30 = vpop.f32.mrf.mxu1 }
 0x38d   :  { %1854 = vst [vmem:[#allocation7 + $0x100] sm:$0xff] %v1283_v26  ;;  %1856 = vst [vmem:[#allocation7 + $0x110] sm:$0xff] %v1356_v27  ;;  %v1285_v36 = vadd.f32 %v1284_v22, %v2682_v14  ;;  %v1358_v23 = vadd.f32 %v1357_v30, %v2687_v15 }
 0x38e   :  { %v1286_v31 = vpop.f32.mrf.mxu0  ;;  %v1359_v40 = vpop.f32.mrf.mxu1 }
 0x38f   :  { %1855 = vst [vmem:[#allocation7 + $0x108] sm:$0xff] %v1285_v36  ;;  %1857 = vst [vmem:[#allocation7 + $0x118] sm:$0xff] %v1358_v23  ;;  %v1287_v51 = vadd.f32 %v1286_v31, %v2672_v38  ;;  %v1360_v55 = vadd.f32 %v1359_v40, %v2677_v21 }
 0x390   :  { %v1288_v37 = vpop.f32.mrf.mxu0  ;;  %v1361_v39 = vpop.f32.mrf.mxu1 }
 0x391   :  { %1870 = vst [vmem:[#allocation7 + $0x180] sm:$0xff] %v1287_v51  ;;  %1872 = vst [vmem:[#allocation7 + $0x190] sm:$0xff] %v1360_v55  ;;  %v1289_v46 = vadd.f32 %v1288_v37, %v2682_v14  ;;  %v1362_v33 = vadd.f32 %v1361_v39, %v2687_v15 }
 0x393   :  { %1871 = vst [vmem:[#allocation7 + $0x188] sm:$0xff] %v1289_v46  ;;  %1873 = vst [vmem:[#allocation7 + $0x198] sm:$0xff] %v1362_v33 }
 0x395   :  { %v1292_v34 = vpop.f32.mrf.mxu0  ;;  %v1365_v42 = vpop.f32.mrf.mxu1 }
 0x396   :  { %v1293_v6 = vadd.f32 %v1292_v34, %v2672_v38  ;;  %v1366_v43 = vadd.f32 %v1365_v42, %v2677_v21 }
 0x397   :  { %v1294_v47 = vpop.f32.mrf.mxu0  ;;  %v1367_v56 = vpop.f32.mrf.mxu1 }
 0x398   :  { %1886 = vst [vmem:[#allocation7 + $0x200] sm:$0xff] %v1293_v6  ;;  %1888 = vst [vmem:[#allocation7 + $0x210] sm:$0xff] %v1366_v43  ;;  %v1295_v1 = vadd.f32 %v1294_v47, %v2682_v14  ;;  %v1368_v2 = vadd.f32 %v1367_v56, %v2687_v15 }
 0x399   :  { %v1296_v59 = vpop.f32.mrf.mxu0  ;;  %v1369_v63 = vpop.f32.mrf.mxu1 }
 0x39a   :  { %1887 = vst [vmem:[#allocation7 + $0x208] sm:$0xff] %v1295_v1  ;;  %1889 = vst [vmem:[#allocation7 + $0x218] sm:$0xff] %v1368_v2  ;;  %v1297_v60 = vadd.f32 %v1296_v59, %v2672_v38  ;;  %v1370_v0 = vadd.f32 %v1369_v63, %v2677_v21 }
 0x39b   :  { %v1298_v3 = vpop.f32.mrf.mxu0  ;;  %v1371_v57 = vpop.f32.mrf.mxu1 }
 0x39c   :  { %1902 = vst [vmem:[#allocation7 + $0x280] sm:$0xff] %v1297_v60  ;;  %1904 = vst [vmem:[#allocation7 + $0x290] sm:$0xff] %v1370_v0  ;;  %v1299_v61 = vadd.f32 %v1298_v3, %v2682_v14  ;;  %v1372_v58 = vadd.f32 %v1371_v57, %v2687_v15 }
 0x39d   :  { %v1302_v62 = vpop.f32.mrf.mxu0  ;;  %v1375_v4 = vpop.f32.mrf.mxu1 }
 0x39e   :  { %1903 = vst [vmem:[#allocation7 + $0x288] sm:$0xff] %v1299_v61  ;;  %1905 = vst [vmem:[#allocation7 + $0x298] sm:$0xff] %v1372_v58  ;;  %v1303_v5 = vadd.f32 %v1302_v62, %v2672_v38  ;;  %v1376_v7 = vadd.f32 %v1375_v4, %v2677_v21 }
 0x39f   :  { %v1304_v16 = vpop.f32.mrf.mxu0  ;;  %v1377_v17 = vpop.f32.mrf.mxu1 }
 0x3a0   :  { %1918 = vst [vmem:[#allocation7 + $0x300] sm:$0xff] %v1303_v5  ;;  %1920 = vst [vmem:[#allocation7 + $0x310] sm:$0xff] %v1376_v7  ;;  %v1305_v18 = vadd.f32 %v1304_v16, %v2682_v14  ;;  %v1378_v24 = vadd.f32 %v1377_v17, %v2687_v15 }
 0x3a1   :  { %v1306_v29 = vpop.f32.mrf.mxu0  ;;  %v1379_v32 = vpop.f32.mrf.mxu1 }
 0x3a2   :  { %1919 = vst [vmem:[#allocation7 + $0x308] sm:$0xff] %v1305_v18  ;;  %1921 = vst [vmem:[#allocation7 + $0x318] sm:$0xff] %v1378_v24  ;;  %v1307_v35 = vadd.f32 %v1306_v29, %v2672_v38  ;;  %v1380_v41 = vadd.f32 %v1379_v32, %v2677_v21  ;;  %v2738_v21 = vrot.slane %v2665_v12, %v1180_v25 }
 0x3a3   :  { %v1308_v52 = vpop.f32.mrf.mxu0  ;;  %v1381_v53 = vpop.f32.mrf.mxu1 }
 0x3a4   :  { %1934 = vst [vmem:[#allocation7 + $0x380] sm:$0xff] %v1307_v35  ;;  %1936 = vst [vmem:[#allocation7 + $0x390] sm:$0xff] %v1380_v41  ;;  %v1309_v45 = vadd.f32 %v1308_v52, %v2682_v14  ;;  %v1382_v38 = vadd.f32 %v1381_v53, %v2687_v15 }
 0x3a5   :  { %v1418_v54 = vpop.f32.mrf.mxu0  ;;  %v1491_v50 = vpop.f32.mrf.mxu1 }
 0x3a6   :  { %1935 = vst [vmem:[#allocation7 + $0x388] sm:$0xff] %v1309_v45  ;;  %1937 = vst [vmem:[#allocation7 + $0x398] sm:$0xff] %v1382_v38  ;;  %v1419_v26 = vadd.f32 %v1418_v54, %v2726_v44  ;;  %v1492_v14 = vadd.f32 %v1491_v50, %v2731_v49 }
 0x3a7   :  { %v1420_v27 = vpop.f32.mrf.mxu0  ;;  %v1493_v15 = vpop.f32.mrf.mxu1 }
 0x3a8   :  { %1826 = vst [vmem:[#allocation7 + $0x20] sm:$0xff] %v1419_v26  ;;  %1828 = vst [vmem:[#allocation7 + $0x30] sm:$0xff] %v1492_v14  ;;  %v1421_v22 = vadd.f32 %v1420_v27, %v2738_v21  ;;  %v1494_v30 = vadd.f32 %v1493_v15, %v2743_v48  ;;  %v2771_v14 = vld [vmem:[#allocation5 + $0x8] sm:$0xff] }
 0x3a9   :  { %v1422_v36 = vpop.f32.mrf.mxu0  ;;  %v1495_v23 = vpop.f32.mrf.mxu1 }
 0x3aa   :  { %1827 = vst [vmem:[#allocation7 + $0x28] sm:$0xff] %v1421_v22  ;;  %1829 = vst [vmem:[#allocation7 + $0x38] sm:$0xff] %v1494_v30  ;;  %v1423_v12 = vadd.f32 %v1422_v36, %v2726_v44  ;;  %v1496_v31 = vadd.f32 %v1495_v23, %v2731_v49 }
 0x3ab   :  { %v1424_v40 = vpop.f32.mrf.mxu0  ;;  %v1497_v51 = vpop.f32.mrf.mxu1 }
 0x3ac   :  { %1842 = vst [vmem:[#allocation7 + $0xa0] sm:$0xff] %v1423_v12  ;;  %1844 = vst [vmem:[#allocation7 + $0xb0] sm:$0xff] %v1496_v31  ;;  %v1425_v55 = vadd.f32 %v1424_v40, %v2738_v21  ;;  %v1498_v37 = vadd.f32 %v1497_v51, %v2743_v48  ;;  %v2780_v12 = vrot.slane %v2771_v14, %v1160_v9 }
 0x3ad   :  { %v1428_v39 = vpop.f32.mrf.mxu0  ;;  %v1501_v46 = vpop.f32.mrf.mxu1  ;;  %v2785_v31 = vrot.slane %v2771_v14, %v1168_v11  ;;  %v2797_v9 = vrot.slane %v2771_v14, %v1172_v13 }
 0x3ae   :  { %1843 = vst [vmem:[#allocation7 + $0xa8] sm:$0xff] %v1425_v55  ;;  %1845 = vst [vmem:[#allocation7 + $0xb8] sm:$0xff] %v1498_v37  ;;  %v1429_v33 = vadd.f32 %v1428_v39, %v2726_v44  ;;  %v1502_v34 = vadd.f32 %v1501_v46, %v2731_v49 }
 0x3af   :  { %v1430_v42 = vpop.f32.mrf.mxu0  ;;  %v1503_v6 = vpop.f32.mrf.mxu1 }
 0x3b0   :  { %1858 = vst [vmem:[#allocation7 + $0x120] sm:$0xff] %v1429_v33  ;;  %1860 = vst [vmem:[#allocation7 + $0x130] sm:$0xff] %v1502_v34  ;;  %v1431_v43 = vadd.f32 %v1430_v42, %v2738_v21  ;;  %v1504_v47 = vadd.f32 %v1503_v6, %v2743_v48 }
 0x3b1   :  { %v1432_v56 = vpop.f32.mrf.mxu0  ;;  %v1505_v1 = vpop.f32.mrf.mxu1 }
 0x3b2   :  { %1859 = vst [vmem:[#allocation7 + $0x128] sm:$0xff] %v1431_v43  ;;  %1861 = vst [vmem:[#allocation7 + $0x138] sm:$0xff] %v1504_v47  ;;  %v1433_v2 = vadd.f32 %v1432_v56, %v2726_v44  ;;  %v1506_v59 = vadd.f32 %v1505_v1, %v2731_v49 }
 0x3b3   :  { %v1434_v63 = vpop.f32.mrf.mxu0  ;;  %v1507_v60 = vpop.f32.mrf.mxu1 }
 0x3b4   :  { %1874 = vst [vmem:[#allocation7 + $0x1a0] sm:$0xff] %v1433_v2  ;;  %1876 = vst [vmem:[#allocation7 + $0x1b0] sm:$0xff] %v1506_v59  ;;  %v1435_v0 = vadd.f32 %v1434_v63, %v2738_v21  ;;  %v1508_v3 = vadd.f32 %v1507_v60, %v2743_v48 }
 0x3b5   :  { %v1438_v57 = vpop.f32.mrf.mxu0  ;;  %v1511_v61 = vpop.f32.mrf.mxu1 }
 0x3b6   :  { %1875 = vst [vmem:[#allocation7 + $0x1a8] sm:$0xff] %v1435_v0  ;;  %1877 = vst [vmem:[#allocation7 + $0x1b8] sm:$0xff] %v1508_v3  ;;  %v1439_v58 = vadd.f32 %v1438_v57, %v2726_v44  ;;  %v1512_v62 = vadd.f32 %v1511_v61, %v2731_v49 }
 0x3b7   :  { %v1440_v4 = vpop.f32.mrf.mxu0  ;;  %v1513_v5 = vpop.f32.mrf.mxu1 }
 0x3b8   :  { %1890 = vst [vmem:[#allocation7 + $0x220] sm:$0xff] %v1439_v58  ;;  %1892 = vst [vmem:[#allocation7 + $0x230] sm:$0xff] %v1512_v62  ;;  %v1441_v7 = vadd.f32 %v1440_v4, %v2738_v21  ;;  %v1514_v16 = vadd.f32 %v1513_v5, %v2743_v48 }
 0x3b9   :  { %v1442_v17 = vpop.f32.mrf.mxu0  ;;  %v1515_v18 = vpop.f32.mrf.mxu1 }
 0x3ba   :  { %1891 = vst [vmem:[#allocation7 + $0x228] sm:$0xff] %v1441_v7  ;;  %1893 = vst [vmem:[#allocation7 + $0x238] sm:$0xff] %v1514_v16  ;;  %v1443_v24 = vadd.f32 %v1442_v17, %v2726_v44  ;;  %v1516_v29 = vadd.f32 %v1515_v18, %v2731_v49 }
 0x3bb   :  { %v1444_v32 = vpop.f32.mrf.mxu0  ;;  %v1517_v35 = vpop.f32.mrf.mxu1 }
 0x3bc   :  { %1906 = vst [vmem:[#allocation7 + $0x2a0] sm:$0xff] %v1443_v24  ;;  %1908 = vst [vmem:[#allocation7 + $0x2b0] sm:$0xff] %v1516_v29  ;;  %v1445_v41 = vadd.f32 %v1444_v32, %v2738_v21  ;;  %v1518_v52 = vadd.f32 %v1517_v35, %v2743_v48 }
 0x3bd   :  { %v1448_v53 = vpop.f32.mrf.mxu0  ;;  %v1521_v45 = vpop.f32.mrf.mxu1 }
 0x3be   :  { %1907 = vst [vmem:[#allocation7 + $0x2a8] sm:$0xff] %v1445_v41  ;;  %1909 = vst [vmem:[#allocation7 + $0x2b8] sm:$0xff] %v1518_v52  ;;  %v1449_v38 = vadd.f32 %v1448_v53, %v2726_v44  ;;  %v1522_v54 = vadd.f32 %v1521_v45, %v2731_v49 }
 0x3bf   :  { %v1450_v50 = vpop.f32.mrf.mxu0  ;;  %v1523_v26 = vpop.f32.mrf.mxu1 }
 0x3c0   :  { %1922 = vst [vmem:[#allocation7 + $0x320] sm:$0xff] %v1449_v38  ;;  %1924 = vst [vmem:[#allocation7 + $0x330] sm:$0xff] %v1522_v54  ;;  %v1451_v27 = vadd.f32 %v1450_v50, %v2738_v21  ;;  %v1524_v15 = vadd.f32 %v1523_v26, %v2743_v48 }
 0x3c1   :  { %v1452_v22 = vpop.f32.mrf.mxu0  ;;  %v1525_v30 = vpop.f32.mrf.mxu1 }
 0x3c2   :  { %1923 = vst [vmem:[#allocation7 + $0x328] sm:$0xff] %v1451_v27  ;;  %1925 = vst [vmem:[#allocation7 + $0x338] sm:$0xff] %v1524_v15  ;;  %v1453_v36 = vadd.f32 %v1452_v22, %v2726_v44  ;;  %v1526_v23 = vadd.f32 %v1525_v30, %v2731_v49  ;;  %v2792_v49 = vrot.slane %v2771_v14, %v1164_v20 }
 0x3c3   :  { %v1454_v40 = vpop.f32.mrf.mxu0  ;;  %v1527_v51 = vpop.f32.mrf.mxu1 }
 0x3c4   :  { %1938 = vst [vmem:[#allocation7 + $0x3a0] sm:$0xff] %v1453_v36  ;;  %1940 = vst [vmem:[#allocation7 + $0x3b0] sm:$0xff] %v1526_v23  ;;  %v1455_v55 = vadd.f32 %v1454_v40, %v2738_v21  ;;  %v1528_v44 = vadd.f32 %v1527_v51, %v2743_v48 }
 0x3c5   :  { %v1564_v11 = vpop.f32.mrf.mxu0  ;;  %v1637_v37 = vpop.f32.mrf.mxu1 }
 0x3c6   :  { %1939 = vst [vmem:[#allocation7 + $0x3a8] sm:$0xff] %v1455_v55  ;;  %1941 = vst [vmem:[#allocation7 + $0x3b8] sm:$0xff] %v1528_v44  ;;  %v1565_v39 = vadd.f32 %v1564_v11, %v2780_v12  ;;  %v1638_v21 = vadd.f32 %v1637_v37, %v2785_v31 }
 0x3c7   :  { %v1566_v46 = vpop.f32.mrf.mxu0  ;;  %v1639_v48 = vpop.f32.mrf.mxu1 }
 0x3c8   :  { %1830 = vst [vmem:[#allocation7 + $0x40] sm:$0xff] %v1565_v39  ;;  %1832 = vst [vmem:[#allocation7 + $0x50] sm:$0xff] %v1638_v21  ;;  %v1567_v20 = vadd.f32 %v1566_v46, %v2792_v49  ;;  %v1640_v33 = vadd.f32 %v1639_v48, %v2797_v9 }
 0x3c9   :  { %v1568_v34 = vpop.f32.mrf.mxu0  ;;  %v1641_v42 = vpop.f32.mrf.mxu1 }
 0x3ca   :  { %1831 = vst [vmem:[#allocation7 + $0x48] sm:$0xff] %v1567_v20  ;;  %1833 = vst [vmem:[#allocation7 + $0x58] sm:$0xff] %v1640_v33  ;;  %v1569_v13 = vadd.f32 %v1568_v34, %v2780_v12  ;;  %v1642_v6 = vadd.f32 %v1641_v42, %v2785_v31  ;;  %v2832_v20 = vrot.slane %v2771_v14, %v1176_v10 }
 0x3cb   :  { %v1570_v43 = vpop.f32.mrf.mxu0  ;;  %v1643_v47 = vpop.f32.mrf.mxu1  ;;  %v2837_v33 = vrot.slane %v2771_v14, %v1184_v19  ;;  %v2849_v10 = vrot.slane %v2771_v14, %v1188_v28 }
 0x3cc   :  { %1846 = vst [vmem:[#allocation7 + $0xc0] sm:$0xff] %v1569_v13  ;;  %1848 = vst [vmem:[#allocation7 + $0xd0] sm:$0xff] %v1642_v6  ;;  %v1571_v56 = vadd.f32 %v1570_v43, %v2792_v49  ;;  %v1644_v1 = vadd.f32 %v1643_v47, %v2797_v9 }
 0x3cd   :  { %v1574_v2 = vpop.f32.mrf.mxu0  ;;  %v1647_v59 = vpop.f32.mrf.mxu1 }
 0x3ce   :  { %1847 = vst [vmem:[#allocation7 + $0xc8] sm:$0xff] %v1571_v56  ;;  %1849 = vst [vmem:[#allocation7 + $0xd8] sm:$0xff] %v1644_v1  ;;  %v1575_v63 = vadd.f32 %v1574_v2, %v2780_v12  ;;  %v1648_v60 = vadd.f32 %v1647_v59, %v2785_v31 }
 0x3cf   :  { %v1576_v0 = vpop.f32.mrf.mxu0  ;;  %v1649_v3 = vpop.f32.mrf.mxu1 }
 0x3d0   :  { %1862 = vst [vmem:[#allocation7 + $0x140] sm:$0xff] %v1575_v63  ;;  %1864 = vst [vmem:[#allocation7 + $0x150] sm:$0xff] %v1648_v60  ;;  %v1577_v57 = vadd.f32 %v1576_v0, %v2792_v49  ;;  %v1650_v61 = vadd.f32 %v1649_v3, %v2797_v9 }
 0x3d1   :  { %v1578_v58 = vpop.f32.mrf.mxu0  ;;  %v1651_v62 = vpop.f32.mrf.mxu1 }
 0x3d2   :  { %1863 = vst [vmem:[#allocation7 + $0x148] sm:$0xff] %v1577_v57  ;;  %1865 = vst [vmem:[#allocation7 + $0x158] sm:$0xff] %v1650_v61  ;;  %v1579_v4 = vadd.f32 %v1578_v58, %v2780_v12  ;;  %v1652_v5 = vadd.f32 %v1651_v62, %v2785_v31 }
 0x3d3   :  { %v1580_v7 = vpop.f32.mrf.mxu0  ;;  %v1653_v16 = vpop.f32.mrf.mxu1 }
 0x3d4   :  { %1878 = vst [vmem:[#allocation7 + $0x1c0] sm:$0xff] %v1579_v4  ;;  %1880 = vst [vmem:[#allocation7 + $0x1d0] sm:$0xff] %v1652_v5  ;;  %v1581_v17 = vadd.f32 %v1580_v7, %v2792_v49  ;;  %v1654_v18 = vadd.f32 %v1653_v16, %v2797_v9 }
 0x3d5   :  { %v1584_v24 = vpop.f32.mrf.mxu0  ;;  %v1657_v29 = vpop.f32.mrf.mxu1 }
 0x3d6   :  { %1879 = vst [vmem:[#allocation7 + $0x1c8] sm:$0xff] %v1581_v17  ;;  %1881 = vst [vmem:[#allocation7 + $0x1d8] sm:$0xff] %v1654_v18  ;;  %v1585_v32 = vadd.f32 %v1584_v24, %v2780_v12  ;;  %v1658_v35 = vadd.f32 %v1657_v29, %v2785_v31 }
 0x3d7   :  { %v1586_v41 = vpop.f32.mrf.mxu0  ;;  %v1659_v52 = vpop.f32.mrf.mxu1 }
 0x3d8   :  { %1894 = vst [vmem:[#allocation7 + $0x240] sm:$0xff] %v1585_v32  ;;  %1896 = vst [vmem:[#allocation7 + $0x250] sm:$0xff] %v1658_v35  ;;  %v1587_v53 = vadd.f32 %v1586_v41, %v2792_v49  ;;  %v1660_v45 = vadd.f32 %v1659_v52, %v2797_v9 }
 0x3d9   :  { %v1588_v38 = vpop.f32.mrf.mxu0  ;;  %v1661_v54 = vpop.f32.mrf.mxu1 }
 0x3da   :  { %1895 = vst [vmem:[#allocation7 + $0x248] sm:$0xff] %v1587_v53  ;;  %1897 = vst [vmem:[#allocation7 + $0x258] sm:$0xff] %v1660_v45  ;;  %v1589_v50 = vadd.f32 %v1588_v38, %v2780_v12  ;;  %v1662_v26 = vadd.f32 %v1661_v54, %v2785_v31 }
 0x3db   :  { %v1590_v27 = vpop.f32.mrf.mxu0  ;;  %v1663_v15 = vpop.f32.mrf.mxu1 }
 0x3dc   :  { %1910 = vst [vmem:[#allocation7 + $0x2c0] sm:$0xff] %v1589_v50  ;;  %1912 = vst [vmem:[#allocation7 + $0x2d0] sm:$0xff] %v1662_v26  ;;  %v1591_v22 = vadd.f32 %v1590_v27, %v2792_v49  ;;  %v1664_v30 = vadd.f32 %v1663_v15, %v2797_v9 }
 0x3dd   :  { %v1594_v36 = vpop.f32.mrf.mxu0  ;;  %v1667_v23 = vpop.f32.mrf.mxu1 }
 0x3de   :  { %1911 = vst [vmem:[#allocation7 + $0x2c8] sm:$0xff] %v1591_v22  ;;  %1913 = vst [vmem:[#allocation7 + $0x2d8] sm:$0xff] %v1664_v30  ;;  %v1595_v40 = vadd.f32 %v1594_v36, %v2780_v12  ;;  %v1668_v51 = vadd.f32 %v1667_v23, %v2785_v31 }
 0x3df   :  { %v1596_v55 = vpop.f32.mrf.mxu0  ;;  %v1669_v44 = vpop.f32.mrf.mxu1 }
 0x3e0   :  { %1926 = vst [vmem:[#allocation7 + $0x340] sm:$0xff] %v1595_v40  ;;  %1928 = vst [vmem:[#allocation7 + $0x350] sm:$0xff] %v1668_v51  ;;  %v1597_v11 = vadd.f32 %v1596_v55, %v2792_v49  ;;  %v1670_v37 = vadd.f32 %v1669_v44, %v2797_v9 }
 0x3e1   :  { %v1598_v39 = vpop.f32.mrf.mxu0  ;;  %v1671_v21 = vpop.f32.mrf.mxu1 }
 0x3e2   :  { %1927 = vst [vmem:[#allocation7 + $0x348] sm:$0xff] %v1597_v11  ;;  %1929 = vst [vmem:[#allocation7 + $0x358] sm:$0xff] %v1670_v37  ;;  %v1599_v46 = vadd.f32 %v1598_v39, %v2780_v12  ;;  %v1672_v48 = vadd.f32 %v1671_v21, %v2785_v31  ;;  %v2844_v31 = vrot.slane %v2771_v14, %v1180_v25 }
 0x3e3   :  { %v1600_v34 = vpop.f32.mrf.mxu0  ;;  %v1673_v42 = vpop.f32.mrf.mxu1 }
 0x3e4   :  { %1942 = vst [vmem:[#allocation7 + $0x3c0] sm:$0xff] %v1599_v46  ;;  %1944 = vst [vmem:[#allocation7 + $0x3d0] sm:$0xff] %v1672_v48  ;;  %v1601_v13 = vadd.f32 %v1600_v34, %v2792_v49  ;;  %v1674_v12 = vadd.f32 %v1673_v42, %v2797_v9 }
 0x3e5   :  { %v1710_v19 = vpop.f32.mrf.mxu0  ;;  %v1783_v6 = vpop.f32.mrf.mxu1 }
 0x3e6   :  { %1943 = vst [vmem:[#allocation7 + $0x3c8] sm:$0xff] %v1601_v13  ;;  %1945 = vst [vmem:[#allocation7 + $0x3d8] sm:$0xff] %v1674_v12  ;;  %v1711_v43 = vadd.f32 %v1710_v19, %v2832_v20  ;;  %v1784_v49 = vadd.f32 %v1783_v6, %v2837_v33 }
 0x3e7   :  { %v1712_v47 = vpop.f32.mrf.mxu0  ;;  %v1785_v9 = vpop.f32.mrf.mxu1 }
 0x3e8   :  { %1834 = vst [vmem:[#allocation7 + $0x60] sm:$0xff] %v1711_v43  ;;  %1836 = vst [vmem:[#allocation7 + $0x70] sm:$0xff] %v1784_v49  ;;  %v1713_v25 = vadd.f32 %v1712_v47, %v2844_v31  ;;  %v1786_v56 = vadd.f32 %v1785_v9, %v2849_v10 }
 0x3e9   :  { %v1714_v8 = vpop.f32.mrf.mxu0  ;;  %v1787_v1 = vpop.f32.mrf.mxu1 }
 0x3ea   :  { %1835 = vst [vmem:[#allocation7 + $0x68] sm:$0xff] %v1713_v25  ;;  %1837 = vst [vmem:[#allocation7 + $0x78] sm:$0xff] %v1786_v56  ;;  %v1715_v28 = vadd.f32 %v1714_v8, %v2832_v20  ;;  %v1788_v14 = vadd.f32 %v1787_v1, %v2837_v33 }
 0x3eb   :  { %v1716_v2 = vpop.f32.mrf.mxu0  ;;  %v1789_v59 = vpop.f32.mrf.mxu1 }
 0x3ec   :  { %1850 = vst [vmem:[#allocation7 + $0xe0] sm:$0xff] %v1715_v28  ;;  %1852 = vst [vmem:[#allocation7 + $0xf0] sm:$0xff] %v1788_v14  ;;  %v1717_v63 = vadd.f32 %v1716_v2, %v2844_v31  ;;  %v1790_v60 = vadd.f32 %v1789_v59, %v2849_v10 }
 0x3ed   :  { %v1720_v0 = vpop.f32.mrf.mxu0  ;;  %v1793_v3 = vpop.f32.mrf.mxu1 }
 0x3ee   :  { %1851 = vst [vmem:[#allocation7 + $0xe8] sm:$0xff] %v1717_v63  ;;  %1853 = vst [vmem:[#allocation7 + $0xf8] sm:$0xff] %v1790_v60  ;;  %v1721_v57 = vadd.f32 %v1720_v0, %v2832_v20  ;;  %v1794_v61 = vadd.f32 %v1793_v3, %v2837_v33 }
 0x3ef   :  { %v1722_v58 = vpop.f32.mrf.mxu0  ;;  %v1795_v62 = vpop.f32.mrf.mxu1 }
 0x3f0   :  { %1866 = vst [vmem:[#allocation7 + $0x160] sm:$0xff] %v1721_v57  ;;  %1868 = vst [vmem:[#allocation7 + $0x170] sm:$0xff] %v1794_v61  ;;  %v1723_v4 = vadd.f32 %v1722_v58, %v2844_v31  ;;  %v1796_v5 = vadd.f32 %v1795_v62, %v2849_v10 }
 0x3f1   :  { %v1724_v7 = vpop.f32.mrf.mxu0  ;;  %v1797_v16 = vpop.f32.mrf.mxu1 }
 0x3f2   :  { %1867 = vst [vmem:[#allocation7 + $0x168] sm:$0xff] %v1723_v4  ;;  %1869 = vst [vmem:[#allocation7 + $0x178] sm:$0xff] %v1796_v5  ;;  %v1725_v17 = vadd.f32 %v1724_v7, %v2832_v20  ;;  %v1798_v18 = vadd.f32 %v1797_v16, %v2837_v33 }
 0x3f3   :  { %v1726_v24 = vpop.f32.mrf.mxu0  ;;  %v1799_v29 = vpop.f32.mrf.mxu1 }
 0x3f4   :  { %1882 = vst [vmem:[#allocation7 + $0x1e0] sm:$0xff] %v1725_v17  ;;  %1884 = vst [vmem:[#allocation7 + $0x1f0] sm:$0xff] %v1798_v18  ;;  %v1727_v32 = vadd.f32 %v1726_v24, %v2844_v31  ;;  %v1800_v35 = vadd.f32 %v1799_v29, %v2849_v10 }
 0x3f5   :  { %v1730_v41 = vpop.f32.mrf.mxu0  ;;  %v1803_v52 = vpop.f32.mrf.mxu1 }
 0x3f6   :  { %1883 = vst [vmem:[#allocation7 + $0x1e8] sm:$0xff] %v1727_v32  ;;  %1885 = vst [vmem:[#allocation7 + $0x1f8] sm:$0xff] %v1800_v35  ;;  %v1731_v53 = vadd.f32 %v1730_v41, %v2832_v20  ;;  %v1804_v45 = vadd.f32 %v1803_v52, %v2837_v33 }
 0x3f7   :  { %v1732_v38 = vpop.f32.mrf.mxu0  ;;  %v1805_v54 = vpop.f32.mrf.mxu1 }
 0x3f8   :  { %1898 = vst [vmem:[#allocation7 + $0x260] sm:$0xff] %v1731_v53  ;;  %1900 = vst [vmem:[#allocation7 + $0x270] sm:$0xff] %v1804_v45  ;;  %v1733_v50 = vadd.f32 %v1732_v38, %v2844_v31  ;;  %v1806_v26 = vadd.f32 %v1805_v54, %v2849_v10 }
 0x3f9   :  { %v1734_v27 = vpop.f32.mrf.mxu0  ;;  %v1807_v15 = vpop.f32.mrf.mxu1 }
 0x3fa   :  { %1899 = vst [vmem:[#allocation7 + $0x268] sm:$0xff] %v1733_v50  ;;  %1901 = vst [vmem:[#allocation7 + $0x278] sm:$0xff] %v1806_v26  ;;  %v1735_v22 = vadd.f32 %v1734_v27, %v2832_v20  ;;  %v1808_v30 = vadd.f32 %v1807_v15, %v2837_v33 }
 0x3fb   :  { %v1736_v36 = vpop.f32.mrf.mxu0  ;;  %v1809_v23 = vpop.f32.mrf.mxu1 }
 0x3fc   :  { %1914 = vst [vmem:[#allocation7 + $0x2e0] sm:$0xff] %v1735_v22  ;;  %1916 = vst [vmem:[#allocation7 + $0x2f0] sm:$0xff] %v1808_v30  ;;  %v1737_v40 = vadd.f32 %v1736_v36, %v2844_v31  ;;  %v1810_v51 = vadd.f32 %v1809_v23, %v2849_v10 }
 0x3fd   :  { %v1740_v55 = vpop.f32.mrf.mxu0  ;;  %v1813_v44 = vpop.f32.mrf.mxu1 }
 0x3fe   :  { %1915 = vst [vmem:[#allocation7 + $0x2e8] sm:$0xff] %v1737_v40  ;;  %1917 = vst [vmem:[#allocation7 + $0x2f8] sm:$0xff] %v1810_v51  ;;  %v1741_v11 = vadd.f32 %v1740_v55, %v2832_v20  ;;  %v1814_v37 = vadd.f32 %v1813_v44, %v2837_v33 }
 0x3ff   :  { %v1742_v39 = vpop.f32.mrf.mxu0  ;;  %v1815_v21 = vpop.f32.mrf.mxu1 }
 0x400   :  { %1930 = vst [vmem:[#allocation7 + $0x360] sm:$0xff] %v1741_v11  ;;  %1932 = vst [vmem:[#allocation7 + $0x370] sm:$0xff] %v1814_v37  ;;  %v1743_v46 = vadd.f32 %v1742_v39, %v2844_v31  ;;  %v1816_v48 = vadd.f32 %v1815_v21, %v2849_v10 }
 0x401   :  { %v1744_v34 = vpop.f32.mrf.mxu0  ;;  %v1817_v42 = vpop.f32.mrf.mxu1 }
 0x402   :  { %1931 = vst [vmem:[#allocation7 + $0x368] sm:$0xff] %v1743_v46  ;;  %1933 = vst [vmem:[#allocation7 + $0x378] sm:$0xff] %v1816_v48  ;;  %v1745_v13 = vadd.f32 %v1744_v34, %v2832_v20  ;;  %v1818_v12 = vadd.f32 %v1817_v42, %v2837_v33 }
 0x403   :  { %v1746_v19 = vpop.f32.mrf.mxu0  ;;  %v1819_v6 = vpop.f32.mrf.mxu1 }
 0x404   :  { %1946 = vst [vmem:[#allocation7 + $0x3e0] sm:$0xff] %v1745_v13  ;;  %1948 = vst [vmem:[#allocation7 + $0x3f0] sm:$0xff] %v1818_v12  ;;  %v1747_v43 = vadd.f32 %v1746_v19, %v2844_v31  ;;  %v1820_v49 = vadd.f32 %v1819_v6, %v2849_v10 }
 0x406   :  { %1947 = vst [vmem:[#allocation7 + $0x3e8] sm:$0xff] %v1747_v43  ;;  %1949 = vst [vmem:[#allocation7 + $0x3f8] sm:$0xff] %v1820_v49 }
 0x407   :  { %2195 = shalt.err (!%p2192_p0)
}
 0x408   :  { %s2216_s30 = smov 2048   ;;  %s2217_s7 = smov 128  }
 0x409   :  { %1961 = dma.vmem_to_hbm [thread:$0]  %s1956_s28, 16384, %s2892_s6, [#allocation4], %s2216_s30, %s2216_s30, %s2217_s7  }
 0x40a   :  { %2208 = dma.done.wait [#allocation4], 16384  }
 0x40b   :  { %2209 = vsyncadd [#allocation4], 4294950912 }
 0x40c   :  { %1965 = vsyncpa [#allocation3], 1 }
 0x40d   :  { %1966 = vsyncpa [#allocation6], 1 }
 0x40e   :  { %1967 = vsyncpa [#allocation4], 1 }

</bundles_post_ra>
